<compile_context>
chip_gen: v7x
topology: tpu7x:2x2x1
jax: 0.10.0
libtpu: 0.0.40
codegen_flags: <defaults>
</compile_context>

<pallas_src>
import numpy as np

import jax
import jax.numpy as jnp
from jax.experimental import pallas as pl
from jax.experimental.pallas import tpu as pltpu


# --------------------------- fused Pallas kernel ---------------------------

def _example_net4_kernel(x_ref, w1_ref, b1_ref, r1_ref, p1_ref,
                         w2_ref, b2_ref, r2_ref, p2_ref,
                         w3_ref, b3_ref, wfc_ref, o_ref):
    """Whole ExampleNet4 forward for one image; everything stays in VMEM."""
    img = x_ref[0]                                          # (32, 32*3) bf16

    # conv1 5x5, 3->8 (+bias, ReLU): (32, 32*3) -> (28, 28*8)
    acc = jnp.zeros((28, 224), jnp.float32)
    for ki in range(5):
        acc += jnp.dot(img[ki:ki + 28, :], w1_ref[ki],
                       preferred_element_type=jnp.float32)
    a = jnp.maximum(acc + b1_ref[...], 0.0).astype(jnp.bfloat16)

    # avgpool 2x2: (28, 28*8) -> (14, 14*8), via row / lane pooling matmuls
    a = jnp.dot(r1_ref[...], a,
                preferred_element_type=jnp.float32).astype(jnp.bfloat16)
    a = jnp.dot(a, p1_ref[...],
                preferred_element_type=jnp.float32).astype(jnp.bfloat16)

    # conv2 3x3, 8->16 (+bias, ReLU): (14, 14*8) -> (12, 12*16)
    acc = jnp.zeros((12, 192), jnp.float32)
    for ki in range(3):
        acc += jnp.dot(a[ki:ki + 12, :], w2_ref[ki],
                       preferred_element_type=jnp.float32)
    a = jnp.maximum(acc + b2_ref[...], 0.0).astype(jnp.bfloat16)

    # avgpool 2x2: (12, 12*16) -> (6, 6*16)
    a = jnp.dot(r2_ref[...], a,
                preferred_element_type=jnp.float32).astype(jnp.bfloat16)
    a = jnp.dot(a, p2_ref[...],
                preferred_element_type=jnp.float32).astype(jnp.bfloat16)

    # conv3 3x3, 16->32 (+bias, ReLU): (6, 6*16) -> (4, 4*32)
    acc = jnp.zeros((4, 128), jnp.float32)
    for ki in range(3):
        acc += jnp.dot(a[ki:ki + 4, :], w3_ref[ki],
                       preferred_element_type=jnp.float32)
    a = jnp.maximum(acc + b3_ref[...], 0.0).astype(jnp.bfloat16)

    # fc1 512->10 (no bias); wfc pre-permuted to (h, w*32 + c, out) so the
    # PyTorch NCHW flatten order (c, h, w) is respected.
    logits = jnp.zeros((1, 10), jnp.float32)
    for h in range(4):
        logits += jnp.dot(a[h:h + 1, :], wfc_ref[h],
                          preferred_element_type=jnp.float32)
    o_ref[0] = logits


# ------------------------- one-time weight packing --------------------------

def _banded(w_oihw, w_in):
    """OIHW conv weight -> per-ki banded matmul matrices.

    Returns wk of shape (kh, w_in*cin, wo*cout) such that, for an image slab
    x of shape (h_in, w_in*cin) with lane index w*cin + ci,
        out[i, :] = sum_ki x[i + ki, :] @ wk[ki]
    is the VALID conv output row i with lane index w*cout + co.
    """
    w = np.asarray(w_oihw, np.float32)
    cout, cin, kh, kw = w.shape
    wo = w_in - kw + 1
    wk = np.zeros((kh, w_in * cin, wo * cout), np.float32)
    for ki in range(kh):
        for j in range(wo):
            for kj in range(kw):
                jin = j + kj
                wk[ki, jin * cin:(jin + 1) * cin,
                   j * cout:(j + 1) * cout] = w[:, :, ki, kj].T
    return wk


def _row_pool(h_in):
    r = np.zeros((h_in // 2, h_in), np.float32)
    for i in range(h_in // 2):
        r[i, 2 * i] = r[i, 2 * i + 1] = 0.5
    return r


def _col_pool(w_in, c):
    p = np.zeros((w_in * c, (w_in // 2) * c), np.float32)
    for j in range(w_in // 2):
        for d in range(2):
            for ch in range(c):
                p[(2 * j + d) * c + ch, j * c + ch] = 0.5
    return p


def pack_params(params):
    """PyTorch-layout params -> kernel-ready packed arrays (done once)."""
    def bf16(a):
        return jnp.asarray(a, jnp.bfloat16)

    def bias_row(b, wo):
        return jnp.asarray(np.tile(np.asarray(b, np.float32), wo)[None, :],
                           jnp.float32)

    # fc1: PyTorch flattens NCHW, feature index = c*16 + h*4 + w.
    fcw = np.asarray(params["fc1_w"], np.float32).reshape(10, 32, 4, 4)
    wfc = fcw.transpose(2, 3, 1, 0).reshape(4, 4 * 32, 10)   # (h, w*32+c, out)

    return {
        "w1": bf16(_banded(params["conv1_w"], 32)),    # (5, 96, 224)
        "b1": bias_row(params["conv1_b"], 28),         # (1, 224)
        "r1": bf16(_row_pool(28)),                     # (14, 28)
        "p1": bf16(_col_pool(28, 8)),                  # (224, 112)
        "w2": bf16(_banded(params["conv2_w"], 14)),    # (3, 112, 192)
        "b2": bias_row(params["conv2_b"], 12),         # (1, 192)
        "r2": bf16(_row_pool(12)),                     # (6, 12)
        "p2": bf16(_col_pool(12, 16)),                 # (192, 96)
        "w3": bf16(_banded(params["conv3_w"], 6)),     # (3, 96, 128)
        "b3": bias_row(params["conv3_b"], 4),          # (1, 128)
        "wfc": bf16(wfc),                              # (4, 128, 10)
    }


# ------------------------------ forward pass --------------------------------

def _full_spec(arr):
    zeros = (0,) * arr.ndim
    return pl.BlockSpec(arr.shape, lambda i: zeros)


@jax.jit
def example_net4_forward(x_nchw, packed):
    n = x_nchw.shape[0]
    # NCHW -> NHWC -> (N, H, W*C) slabs, bf16 for the MXU.
    x = jnp.transpose(x_nchw.astype(jnp.float32), (0, 2, 3, 1))
    x = x.reshape(n, 32, 32 * 3).astype(jnp.bfloat16)

    weights = (packed["w1"], packed["b1"], packed["r1"], packed["p1"],
               packed["w2"], packed["b2"], packed["r2"], packed["p2"],
               packed["w3"], packed["b3"], packed["wfc"])

    out = pl.pallas_call(
        _example_net4_kernel,
        out_shape=jax.ShapeDtypeStruct((n, 1, 10), jnp.float32),
        grid=(n,),
        in_specs=[pl.BlockSpec((1, 32, 96), lambda i: (i, 0, 0))]
        + [_full_spec(a) for a in weights],
        out_specs=pl.BlockSpec((1, 1, 10), lambda i: (i, 0, 0)),
        compiler_params=pltpu.CompilerParams(
            dimension_semantics=("parallel",)),
    )(x, *weights)
    return out.reshape(n, 10)


# ------------------------- init + pure-JAX reference ------------------------

def init_params(key):
    ks = jax.random.split(key, 7)

    def conv_w(k, shape):
        fan_in = shape[1] * shape[2] * shape[3]
        return jax.random.normal(k, shape, jnp.float32) / jnp.sqrt(fan_in)

    def vec(k, num, fan_in):
        return jax.random.normal(k, (num,), jnp.float32) / jnp.sqrt(fan_in)

    return {
        "conv1_w": conv_w(ks[0], (8, 3, 5, 5)),
        "conv1_b": vec(ks[1], 8, 3 * 25),
        "conv2_w": conv_w(ks[2], (16, 8, 3, 3)),
        "conv2_b": vec(ks[3], 16, 8 * 9),
        "conv3_w": conv_w(ks[4], (32, 16, 3, 3)),
        "conv3_b": vec(ks[5], 32, 16 * 9),
        "fc1_w": jax.random.normal(ks[6], (10, 512), jnp.float32)
                 / jnp.sqrt(512.0),
    }


def reference_forward(x_nchw, params):
    x = x_nchw.astype(jnp.float32)

    def conv_relu(h, w, b):
        y = jax.lax.conv_general_dilated(
            h, w, window_strides=(1, 1), padding="VALID",
            dimension_numbers=("NCHW", "OIHW", "NCHW"))
        return jax.nn.relu(y + b[None, :, None, None])

    def avgpool2(h):
        return 0.25 * (h[:, :, 0::2, 0::2] + h[:, :, 0::2, 1::2]
                       + h[:, :, 1::2, 0::2] + h[:, :, 1::2, 1::2])

    out = avgpool2(conv_relu(x, params["conv1_w"], params["conv1_b"]))
    out = avgpool2(conv_relu(out, params["conv2_w"], params["conv2_b"]))
    out = conv_relu(out, params["conv3_w"], params["conv3_b"])
    out = out.reshape(out.shape[0], -1)        # NCHW flatten: (c, h, w)
    return out @ params["fc1_w"].T


# ----------------------------------- main ------------------------------------

if __name__ == "__main__":
    key = jax.random.PRNGKey(0)
    k_x, k_p = jax.random.split(key)
    x = jax.random.normal(k_x, (2, 3, 32, 32), jnp.float32)

    params = init_params(k_p)
    packed = pack_params(params)          # one-time weight packing (hoisted)

    logits = example_net4_forward(x, packed)
    logits = jax.block_until_ready(logits)

    assert logits.shape == (2, 10), logits.shape
    assert bool(jnp.all(jnp.isfinite(logits)))

    # Loose check vs. an f32 XLA reference (kernel runs its matmuls in bf16).
    ref = reference_forward(x, params)
    err = float(jnp.max(jnp.abs(logits - ref)))
    scale = max(1.0, float(jnp.max(jnp.abs(ref))))
    assert err <= 0.1 * scale, f"mismatch: max|err|={err}, scale={scale}"

    print("KERNEL_OK")
</pallas_src>

<mosaic_0001>
module attributes {stable_mosaic.version = 11 : i64} {
  func.func @_example_net4_kernel(%arg0: i32, %arg1: memref<1x32x96xbf16, #tpu.memory_space<vmem>>, %arg2: memref<5x96x224xbf16, #tpu.memory_space<vmem>>, %arg3: memref<1x224xf32, #tpu.memory_space<vmem>>, %arg4: memref<14x28xbf16, #tpu.memory_space<vmem>>, %arg5: memref<224x112xbf16, #tpu.memory_space<vmem>>, %arg6: memref<3x112x192xbf16, #tpu.memory_space<vmem>>, %arg7: memref<1x192xf32, #tpu.memory_space<vmem>>, %arg8: memref<6x12xbf16, #tpu.memory_space<vmem>>, %arg9: memref<192x96xbf16, #tpu.memory_space<vmem>>, %arg10: memref<3x96x128xbf16, #tpu.memory_space<vmem>>, %arg11: memref<1x128xf32, #tpu.memory_space<vmem>>, %arg12: memref<4x128x10xbf16, #tpu.memory_space<vmem>>, %arg13: memref<1x1x10xf32, #tpu.memory_space<vmem>>) attributes {dimension_semantics = [#tpu.dimension_semantics<parallel>], iteration_bounds = array<i64: 2>, scalar_prefetch = 0 : i64, scratch_operands = 0 : i64, tpu.core_type = #tpu.core_type<tc>, window_params = [{transform_indices = @transform_0, window_bounds = array<i64: 1, 32, 96>}, {pipeline_mode = #tpu.pipeline_mode<synchronous>, transform_indices = @transform_1, window_bounds = array<i64: 5, 96, 224>}, {pipeline_mode = #tpu.pipeline_mode<synchronous>, transform_indices = @transform_2, window_bounds = array<i64: 1, 224>}, {pipeline_mode = #tpu.pipeline_mode<synchronous>, transform_indices = @transform_3, window_bounds = array<i64: 14, 28>}, {pipeline_mode = #tpu.pipeline_mode<synchronous>, transform_indices = @transform_4, window_bounds = array<i64: 224, 112>}, {pipeline_mode = #tpu.pipeline_mode<synchronous>, transform_indices = @transform_5, window_bounds = array<i64: 3, 112, 192>}, {pipeline_mode = #tpu.pipeline_mode<synchronous>, transform_indices = @transform_6, window_bounds = array<i64: 1, 192>}, {pipeline_mode = #tpu.pipeline_mode<synchronous>, transform_indices = @transform_7, window_bounds = array<i64: 6, 12>}, {pipeline_mode = #tpu.pipeline_mode<synchronous>, transform_indices = @transform_8, window_bounds = array<i64: 192, 96>}, {pipeline_mode = #tpu.pipeline_mode<synchronous>, transform_indices = @transform_9, window_bounds = array<i64: 3, 96, 128>}, {pipeline_mode = #tpu.pipeline_mode<synchronous>, transform_indices = @transform_10, window_bounds = array<i64: 1, 128>}, {pipeline_mode = #tpu.pipeline_mode<synchronous>, transform_indices = @transform_11, window_bounds = array<i64: 4, 128, 10>}, {transform_indices = @transform_12, window_bounds = array<i64: 1, 1, 10>}]} {
    %c0 = arith.constant 0 : index
    %c0_0 = arith.constant 0 : index
    %c0_1 = arith.constant 0 : index
    %0 = vector.load %arg1[%c0, %c0_0, %c0_1] : memref<1x32x96xbf16, #tpu.memory_space<vmem>>, vector<1x32x96xbf16>
    %1 = vector.shape_cast %0 : vector<1x32x96xbf16> to vector<32x96xbf16>
    %cst = arith.constant 0.000000e+00 : f32
    %2 = vector.broadcast %cst : f32 to vector<28x224xf32>
    %3 = vector.extract_strided_slice %1 {offsets = [0, 0], sizes = [28, 96], strides = [1, 1]} : vector<32x96xbf16> to vector<28x96xbf16>
    %c0_2 = arith.constant 0 : index
    %c0_3 = arith.constant 0 : index
    %c0_4 = arith.constant 0 : index
    %4 = vector.load %arg2[%c0_2, %c0_3, %c0_4] : memref<5x96x224xbf16, #tpu.memory_space<vmem>>, vector<1x96x224xbf16>
    %5 = vector.shape_cast %4 : vector<1x96x224xbf16> to vector<96x224xbf16>
    %cst_5 = arith.constant dense<0.000000e+00> : vector<28x224xf32>
    %6 = tpu.matmul %3, %5, %cst_5 {dimension_numbers = #tpu.dot_dimension_numbers<[1], [0], [0], [1], [0, 0, 1, 1], [], []>} : vector<28x96xbf16>, vector<96x224xbf16>, vector<28x224xf32> -> vector<28x224xf32>
    %7 = arith.addf %2, %6 : vector<28x224xf32>
    %8 = vector.extract_strided_slice %1 {offsets = [1, 0], sizes = [28, 96], strides = [1, 1]} : vector<32x96xbf16> to vector<28x96xbf16>
    %c1 = arith.constant 1 : index
    %c0_6 = arith.constant 0 : index
    %c0_7 = arith.constant 0 : index
    %9 = vector.load %arg2[%c1, %c0_6, %c0_7] : memref<5x96x224xbf16, #tpu.memory_space<vmem>>, vector<1x96x224xbf16>
    %10 = vector.shape_cast %9 : vector<1x96x224xbf16> to vector<96x224xbf16>
    %cst_8 = arith.constant dense<0.000000e+00> : vector<28x224xf32>
    %11 = tpu.matmul %8, %10, %cst_8 {dimension_numbers = #tpu.dot_dimension_numbers<[1], [0], [0], [1], [0, 0, 1, 1], [], []>} : vector<28x96xbf16>, vector<96x224xbf16>, vector<28x224xf32> -> vector<28x224xf32>
    %12 = arith.addf %7, %11 : vector<28x224xf32>
    %13 = vector.extract_strided_slice %1 {offsets = [2, 0], sizes = [28, 96], strides = [1, 1]} : vector<32x96xbf16> to vector<28x96xbf16>
    %c2 = arith.constant 2 : index
    %c0_9 = arith.constant 0 : index
    %c0_10 = arith.constant 0 : index
    %14 = vector.load %arg2[%c2, %c0_9, %c0_10] : memref<5x96x224xbf16, #tpu.memory_space<vmem>>, vector<1x96x224xbf16>
    %15 = vector.shape_cast %14 : vector<1x96x224xbf16> to vector<96x224xbf16>
    %cst_11 = arith.constant dense<0.000000e+00> : vector<28x224xf32>
    %16 = tpu.matmul %13, %15, %cst_11 {dimension_numbers = #tpu.dot_dimension_numbers<[1], [0], [0], [1], [0, 0, 1, 1], [], []>} : vector<28x96xbf16>, vector<96x224xbf16>, vector<28x224xf32> -> vector<28x224xf32>
    %17 = arith.addf %12, %16 : vector<28x224xf32>
    %18 = vector.extract_strided_slice %1 {offsets = [3, 0], sizes = [28, 96], strides = [1, 1]} : vector<32x96xbf16> to vector<28x96xbf16>
    %c3 = arith.constant 3 : index
    %c0_12 = arith.constant 0 : index
    %c0_13 = arith.constant 0 : index
    %19 = vector.load %arg2[%c3, %c0_12, %c0_13] : memref<5x96x224xbf16, #tpu.memory_space<vmem>>, vector<1x96x224xbf16>
    %20 = vector.shape_cast %19 : vector<1x96x224xbf16> to vector<96x224xbf16>
    %cst_14 = arith.constant dense<0.000000e+00> : vector<28x224xf32>
    %21 = tpu.matmul %18, %20, %cst_14 {dimension_numbers = #tpu.dot_dimension_numbers<[1], [0], [0], [1], [0, 0, 1, 1], [], []>} : vector<28x96xbf16>, vector<96x224xbf16>, vector<28x224xf32> -> vector<28x224xf32>
    %22 = arith.addf %17, %21 : vector<28x224xf32>
    %23 = vector.extract_strided_slice %1 {offsets = [4, 0], sizes = [28, 96], strides = [1, 1]} : vector<32x96xbf16> to vector<28x96xbf16>
    %c4 = arith.constant 4 : index
    %c0_15 = arith.constant 0 : index
    %c0_16 = arith.constant 0 : index
    %24 = vector.load %arg2[%c4, %c0_15, %c0_16] : memref<5x96x224xbf16, #tpu.memory_space<vmem>>, vector<1x96x224xbf16>
    %25 = vector.shape_cast %24 : vector<1x96x224xbf16> to vector<96x224xbf16>
    %cst_17 = arith.constant dense<0.000000e+00> : vector<28x224xf32>
    %26 = tpu.matmul %23, %25, %cst_17 {dimension_numbers = #tpu.dot_dimension_numbers<[1], [0], [0], [1], [0, 0, 1, 1], [], []>} : vector<28x96xbf16>, vector<96x224xbf16>, vector<28x224xf32> -> vector<28x224xf32>
    %27 = arith.addf %22, %26 : vector<28x224xf32>
    %c0_18 = arith.constant 0 : index
    %c0_19 = arith.constant 0 : index
    %28 = vector.load %arg3[%c0_18, %c0_19] : memref<1x224xf32, #tpu.memory_space<vmem>>, vector<1x224xf32>
    %29 = vector.broadcast %28 : vector<1x224xf32> to vector<28x224xf32>
    %30 = arith.addf %27, %29 : vector<28x224xf32>
    %cst_20 = arith.constant 0.000000e+00 : f32
    %31 = vector.broadcast %cst_20 : f32 to vector<28x224xf32>
    %32 = arith.maximumf %30, %31 : vector<28x224xf32>
    %33 = arith.truncf %32 : vector<28x224xf32> to vector<28x224xbf16>
    %c0_21 = arith.constant 0 : index
    %c0_22 = arith.constant 0 : index
    %34 = vector.load %arg4[%c0_21, %c0_22] : memref<14x28xbf16, #tpu.memory_space<vmem>>, vector<14x28xbf16>
    %cst_23 = arith.constant dense<0.000000e+00> : vector<14x224xf32>
    %35 = tpu.matmul %34, %33, %cst_23 {dimension_numbers = #tpu.dot_dimension_numbers<[1], [0], [0], [1], [0, 0, 1, 1], [], []>} : vector<14x28xbf16>, vector<28x224xbf16>, vector<14x224xf32> -> vector<14x224xf32>
    %36 = arith.truncf %35 : vector<14x224xf32> to vector<14x224xbf16>
    %c0_24 = arith.constant 0 : index
    %c0_25 = arith.constant 0 : index
    %37 = vector.load %arg5[%c0_24, %c0_25] : memref<224x112xbf16, #tpu.memory_space<vmem>>, vector<224x112xbf16>
    %cst_26 = arith.constant dense<0.000000e+00> : vector<14x112xf32>
    %38 = tpu.matmul %36, %37, %cst_26 {dimension_numbers = #tpu.dot_dimension_numbers<[1], [0], [0], [1], [0, 0, 1, 1], [], []>} : vector<14x224xbf16>, vector<224x112xbf16>, vector<14x112xf32> -> vector<14x112xf32>
    %39 = arith.truncf %38 : vector<14x112xf32> to vector<14x112xbf16>
    %cst_27 = arith.constant 0.000000e+00 : f32
    %40 = vector.broadcast %cst_27 : f32 to vector<12x192xf32>
    %41 = vector.extract_strided_slice %39 {offsets = [0, 0], sizes = [12, 112], strides = [1, 1]} : vector<14x112xbf16> to vector<12x112xbf16>
    %c0_28 = arith.constant 0 : index
    %c0_29 = arith.constant 0 : index
    %c0_30 = arith.constant 0 : index
    %42 = vector.load %arg6[%c0_28, %c0_29, %c0_30] : memref<3x112x192xbf16, #tpu.memory_space<vmem>>, vector<1x112x192xbf16>
    %43 = vector.shape_cast %42 : vector<1x112x192xbf16> to vector<112x192xbf16>
    %cst_31 = arith.constant dense<0.000000e+00> : vector<12x192xf32>
    %44 = tpu.matmul %41, %43, %cst_31 {dimension_numbers = #tpu.dot_dimension_numbers<[1], [0], [0], [1], [0, 0, 1, 1], [], []>} : vector<12x112xbf16>, vector<112x192xbf16>, vector<12x192xf32> -> vector<12x192xf32>
    %45 = arith.addf %40, %44 : vector<12x192xf32>
    %46 = vector.extract_strided_slice %39 {offsets = [1, 0], sizes = [12, 112], strides = [1, 1]} : vector<14x112xbf16> to vector<12x112xbf16>
    %c1_32 = arith.constant 1 : index
    %c0_33 = arith.constant 0 : index
    %c0_34 = arith.constant 0 : index
    %47 = vector.load %arg6[%c1_32, %c0_33, %c0_34] : memref<3x112x192xbf16, #tpu.memory_space<vmem>>, vector<1x112x192xbf16>
    %48 = vector.shape_cast %47 : vector<1x112x192xbf16> to vector<112x192xbf16>
    %cst_35 = arith.constant dense<0.000000e+00> : vector<12x192xf32>
    %49 = tpu.matmul %46, %48, %cst_35 {dimension_numbers = #tpu.dot_dimension_numbers<[1], [0], [0], [1], [0, 0, 1, 1], [], []>} : vector<12x112xbf16>, vector<112x192xbf16>, vector<12x192xf32> -> vector<12x192xf32>
    %50 = arith.addf %45, %49 : vector<12x192xf32>
    %51 = vector.extract_strided_slice %39 {offsets = [2, 0], sizes = [12, 112], strides = [1, 1]} : vector<14x112xbf16> to vector<12x112xbf16>
    %c2_36 = arith.constant 2 : index
    %c0_37 = arith.constant 0 : index
    %c0_38 = arith.constant 0 : index
    %52 = vector.load %arg6[%c2_36, %c0_37, %c0_38] : memref<3x112x192xbf16, #tpu.memory_space<vmem>>, vector<1x112x192xbf16>
    %53 = vector.shape_cast %52 : vector<1x112x192xbf16> to vector<112x192xbf16>
    %cst_39 = arith.constant dense<0.000000e+00> : vector<12x192xf32>
    %54 = tpu.matmul %51, %53, %cst_39 {dimension_numbers = #tpu.dot_dimension_numbers<[1], [0], [0], [1], [0, 0, 1, 1], [], []>} : vector<12x112xbf16>, vector<112x192xbf16>, vector<12x192xf32> -> vector<12x192xf32>
    %55 = arith.addf %50, %54 : vector<12x192xf32>
    %c0_40 = arith.constant 0 : index
    %c0_41 = arith.constant 0 : index
    %56 = vector.load %arg7[%c0_40, %c0_41] : memref<1x192xf32, #tpu.memory_space<vmem>>, vector<1x192xf32>
    %57 = vector.broadcast %56 : vector<1x192xf32> to vector<12x192xf32>
    %58 = arith.addf %55, %57 : vector<12x192xf32>
    %cst_42 = arith.constant 0.000000e+00 : f32
    %59 = vector.broadcast %cst_42 : f32 to vector<12x192xf32>
    %60 = arith.maximumf %58, %59 : vector<12x192xf32>
    %61 = arith.truncf %60 : vector<12x192xf32> to vector<12x192xbf16>
    %c0_43 = arith.constant 0 : index
    %c0_44 = arith.constant 0 : index
    %62 = vector.load %arg8[%c0_43, %c0_44] : memref<6x12xbf16, #tpu.memory_space<vmem>>, vector<6x12xbf16>
    %cst_45 = arith.constant dense<0.000000e+00> : vector<6x192xf32>
    %63 = tpu.matmul %62, %61, %cst_45 {dimension_numbers = #tpu.dot_dimension_numbers<[1], [0], [0], [1], [0, 0, 1, 1], [], []>} : vector<6x12xbf16>, vector<12x192xbf16>, vector<6x192xf32> -> vector<6x192xf32>
    %64 = arith.truncf %63 : vector<6x192xf32> to vector<6x192xbf16>
    %c0_46 = arith.constant 0 : index
    %c0_47 = arith.constant 0 : index
    %65 = vector.load %arg9[%c0_46, %c0_47] : memref<192x96xbf16, #tpu.memory_space<vmem>>, vector<192x96xbf16>
    %cst_48 = arith.constant dense<0.000000e+00> : vector<6x96xf32>
    %66 = tpu.matmul %64, %65, %cst_48 {dimension_numbers = #tpu.dot_dimension_numbers<[1], [0], [0], [1], [0, 0, 1, 1], [], []>} : vector<6x192xbf16>, vector<192x96xbf16>, vector<6x96xf32> -> vector<6x96xf32>
    %67 = arith.truncf %66 : vector<6x96xf32> to vector<6x96xbf16>
    %cst_49 = arith.constant 0.000000e+00 : f32
    %68 = vector.broadcast %cst_49 : f32 to vector<4x128xf32>
    %69 = vector.extract_strided_slice %67 {offsets = [0, 0], sizes = [4, 96], strides = [1, 1]} : vector<6x96xbf16> to vector<4x96xbf16>
    %c0_50 = arith.constant 0 : index
    %c0_51 = arith.constant 0 : index
    %c0_52 = arith.constant 0 : index
    %70 = vector.load %arg10[%c0_50, %c0_51, %c0_52] : memref<3x96x128xbf16, #tpu.memory_space<vmem>>, vector<1x96x128xbf16>
    %71 = vector.shape_cast %70 : vector<1x96x128xbf16> to vector<96x128xbf16>
    %cst_53 = arith.constant dense<0.000000e+00> : vector<4x128xf32>
    %72 = tpu.matmul %69, %71, %cst_53 {dimension_numbers = #tpu.dot_dimension_numbers<[1], [0], [0], [1], [0, 0, 1, 1], [], []>} : vector<4x96xbf16>, vector<96x128xbf16>, vector<4x128xf32> -> vector<4x128xf32>
    %73 = arith.addf %68, %72 : vector<4x128xf32>
    %74 = vector.extract_strided_slice %67 {offsets = [1, 0], sizes = [4, 96], strides = [1, 1]} : vector<6x96xbf16> to vector<4x96xbf16>
    %c1_54 = arith.constant 1 : index
    %c0_55 = arith.constant 0 : index
    %c0_56 = arith.constant 0 : index
    %75 = vector.load %arg10[%c1_54, %c0_55, %c0_56] : memref<3x96x128xbf16, #tpu.memory_space<vmem>>, vector<1x96x128xbf16>
    %76 = vector.shape_cast %75 : vector<1x96x128xbf16> to vector<96x128xbf16>
    %cst_57 = arith.constant dense<0.000000e+00> : vector<4x128xf32>
    %77 = tpu.matmul %74, %76, %cst_57 {dimension_numbers = #tpu.dot_dimension_numbers<[1], [0], [0], [1], [0, 0, 1, 1], [], []>} : vector<4x96xbf16>, vector<96x128xbf16>, vector<4x128xf32> -> vector<4x128xf32>
    %78 = arith.addf %73, %77 : vector<4x128xf32>
    %79 = vector.extract_strided_slice %67 {offsets = [2, 0], sizes = [4, 96], strides = [1, 1]} : vector<6x96xbf16> to vector<4x96xbf16>
    %c2_58 = arith.constant 2 : index
    %c0_59 = arith.constant 0 : index
    %c0_60 = arith.constant 0 : index
    %80 = vector.load %arg10[%c2_58, %c0_59, %c0_60] : memref<3x96x128xbf16, #tpu.memory_space<vmem>>, vector<1x96x128xbf16>
    %81 = vector.shape_cast %80 : vector<1x96x128xbf16> to vector<96x128xbf16>
    %cst_61 = arith.constant dense<0.000000e+00> : vector<4x128xf32>
    %82 = tpu.matmul %79, %81, %cst_61 {dimension_numbers = #tpu.dot_dimension_numbers<[1], [0], [0], [1], [0, 0, 1, 1], [], []>} : vector<4x96xbf16>, vector<96x128xbf16>, vector<4x128xf32> -> vector<4x128xf32>
    %83 = arith.addf %78, %82 : vector<4x128xf32>
    %c0_62 = arith.constant 0 : index
    %c0_63 = arith.constant 0 : index
    %84 = vector.load %arg11[%c0_62, %c0_63] : memref<1x128xf32, #tpu.memory_space<vmem>>, vector<1x128xf32>
    %85 = vector.broadcast %84 : vector<1x128xf32> to vector<4x128xf32>
    %86 = arith.addf %83, %85 : vector<4x128xf32>
    %cst_64 = arith.constant 0.000000e+00 : f32
    %87 = vector.broadcast %cst_64 : f32 to vector<4x128xf32>
    %88 = arith.maximumf %86, %87 : vector<4x128xf32>
    %89 = arith.truncf %88 : vector<4x128xf32> to vector<4x128xbf16>
    %cst_65 = arith.constant 0.000000e+00 : f32
    %90 = vector.broadcast %cst_65 : f32 to vector<1x10xf32>
    %91 = vector.extract_strided_slice %89 {offsets = [0, 0], sizes = [1, 128], strides = [1, 1]} : vector<4x128xbf16> to vector<1x128xbf16>
    %c0_66 = arith.constant 0 : index
    %c0_67 = arith.constant 0 : index
    %c0_68 = arith.constant 0 : index
    %92 = vector.load %arg12[%c0_66, %c0_67, %c0_68] : memref<4x128x10xbf16, #tpu.memory_space<vmem>>, vector<1x128x10xbf16>
    %93 = vector.shape_cast %92 : vector<1x128x10xbf16> to vector<128x10xbf16>
    %cst_69 = arith.constant dense<0.000000e+00> : vector<1x10xf32>
    %94 = tpu.matmul %91, %93, %cst_69 {dimension_numbers = #tpu.dot_dimension_numbers<[1], [0], [0], [1], [0, 0, 1, 1], [], []>} : vector<1x128xbf16>, vector<128x10xbf16>, vector<1x10xf32> -> vector<1x10xf32>
    %95 = arith.addf %90, %94 : vector<1x10xf32>
    %96 = vector.extract_strided_slice %89 {offsets = [1, 0], sizes = [1, 128], strides = [1, 1]} : vector<4x128xbf16> to vector<1x128xbf16>
    %c1_70 = arith.constant 1 : index
    %c0_71 = arith.constant 0 : index
    %c0_72 = arith.constant 0 : index
    %97 = vector.load %arg12[%c1_70, %c0_71, %c0_72] : memref<4x128x10xbf16, #tpu.memory_space<vmem>>, vector<1x128x10xbf16>
    %98 = vector.shape_cast %97 : vector<1x128x10xbf16> to vector<128x10xbf16>
    %cst_73 = arith.constant dense<0.000000e+00> : vector<1x10xf32>
    %99 = tpu.matmul %96, %98, %cst_73 {dimension_numbers = #tpu.dot_dimension_numbers<[1], [0], [0], [1], [0, 0, 1, 1], [], []>} : vector<1x128xbf16>, vector<128x10xbf16>, vector<1x10xf32> -> vector<1x10xf32>
    %100 = arith.addf %95, %99 : vector<1x10xf32>
    %101 = vector.extract_strided_slice %89 {offsets = [2, 0], sizes = [1, 128], strides = [1, 1]} : vector<4x128xbf16> to vector<1x128xbf16>
    %c2_74 = arith.constant 2 : index
    %c0_75 = arith.constant 0 : index
    %c0_76 = arith.constant 0 : index
    %102 = vector.load %arg12[%c2_74, %c0_75, %c0_76] : memref<4x128x10xbf16, #tpu.memory_space<vmem>>, vector<1x128x10xbf16>
    %103 = vector.shape_cast %102 : vector<1x128x10xbf16> to vector<128x10xbf16>
    %cst_77 = arith.constant dense<0.000000e+00> : vector<1x10xf32>
    %104 = tpu.matmul %101, %103, %cst_77 {dimension_numbers = #tpu.dot_dimension_numbers<[1], [0], [0], [1], [0, 0, 1, 1], [], []>} : vector<1x128xbf16>, vector<128x10xbf16>, vector<1x10xf32> -> vector<1x10xf32>
    %105 = arith.addf %100, %104 : vector<1x10xf32>
    %106 = vector.extract_strided_slice %89 {offsets = [3, 0], sizes = [1, 128], strides = [1, 1]} : vector<4x128xbf16> to vector<1x128xbf16>
    %c3_78 = arith.constant 3 : index
    %c0_79 = arith.constant 0 : index
    %c0_80 = arith.constant 0 : index
    %107 = vector.load %arg12[%c3_78, %c0_79, %c0_80] : memref<4x128x10xbf16, #tpu.memory_space<vmem>>, vector<1x128x10xbf16>
    %108 = vector.shape_cast %107 : vector<1x128x10xbf16> to vector<128x10xbf16>
    %cst_81 = arith.constant dense<0.000000e+00> : vector<1x10xf32>
    %109 = tpu.matmul %106, %108, %cst_81 {dimension_numbers = #tpu.dot_dimension_numbers<[1], [0], [0], [1], [0, 0, 1, 1], [], []>} : vector<1x128xbf16>, vector<128x10xbf16>, vector<1x10xf32> -> vector<1x10xf32>
    %110 = arith.addf %105, %109 : vector<1x10xf32>
    %c0_82 = arith.constant 0 : index
    %c0_83 = arith.constant 0 : index
    %c0_84 = arith.constant 0 : index
    %111 = vector.load %arg13[%c0_82, %c0_83, %c0_84] : memref<1x1x10xf32, #tpu.memory_space<vmem>>, vector<1x1x10xf32>
    %112 = vector.shape_cast %111 : vector<1x1x10xf32> to vector<1x10xf32>
    %113 = vector.shape_cast %110 : vector<1x10xf32> to vector<1x1x10xf32>
    tpu.vector_store %arg13[%c0_82, %c0_83, %c0_84], %113 {strides = array<i32>} : memref<1x1x10xf32, #tpu.memory_space<vmem>>, vector<1x1x10xf32>,
    return
  }
  func.func @transform_0(%arg0: i32) -> (i32, i32, i32) {
    %c0_i32 = arith.constant 0 : i32
    %c0_i32_0 = arith.constant 0 : i32
    %c0_i32_1 = arith.constant 0 : i32
    return %arg0, %c0_i32, %c0_i32_0 : i32, i32, i32
  }
  func.func @transform_1(%arg0: i32) -> (i32, i32, i32) {
    %c0_i32 = arith.constant 0 : i32
    %c0_i32_0 = arith.constant 0 : i32
    %c0_i32_1 = arith.constant 0 : i32
    %c0_i32_2 = arith.constant 0 : i32
    return %c0_i32, %c0_i32_0, %c0_i32_1 : i32, i32, i32
  }
  func.func @transform_2(%arg0: i32) -> (i32, i32) {
    %c0_i32 = arith.constant 0 : i32
    %c0_i32_0 = arith.constant 0 : i32
    %c0_i32_1 = arith.constant 0 : i32
    return %c0_i32, %c0_i32_0 : i32, i32
  }
  func.func @transform_3(%arg0: i32) -> (i32, i32) {
    %c0_i32 = arith.constant 0 : i32
    %c0_i32_0 = arith.constant 0 : i32
    %c0_i32_1 = arith.constant 0 : i32
    return %c0_i32, %c0_i32_0 : i32, i32
  }
  func.func @transform_4(%arg0: i32) -> (i32, i32) {
    %c0_i32 = arith.constant 0 : i32
    %c0_i32_0 = arith.constant 0 : i32
    %c0_i32_1 = arith.constant 0 : i32
    return %c0_i32, %c0_i32_0 : i32, i32
  }
  func.func @transform_5(%arg0: i32) -> (i32, i32, i32) {
    %c0_i32 = arith.constant 0 : i32
    %c0_i32_0 = arith.constant 0 : i32
    %c0_i32_1 = arith.constant 0 : i32
    %c0_i32_2 = arith.constant 0 : i32
    return %c0_i32, %c0_i32_0, %c0_i32_1 : i32, i32, i32
  }
  func.func @transform_6(%arg0: i32) -> (i32, i32) {
    %c0_i32 = arith.constant 0 : i32
    %c0_i32_0 = arith.constant 0 : i32
    %c0_i32_1 = arith.constant 0 : i32
    return %c0_i32, %c0_i32_0 : i32, i32
  }
  func.func @transform_7(%arg0: i32) -> (i32, i32) {
    %c0_i32 = arith.constant 0 : i32
    %c0_i32_0 = arith.constant 0 : i32
    %c0_i32_1 = arith.constant 0 : i32
    return %c0_i32, %c0_i32_0 : i32, i32
  }
  func.func @transform_8(%arg0: i32) -> (i32, i32) {
    %c0_i32 = arith.constant 0 : i32
    %c0_i32_0 = arith.constant 0 : i32
    %c0_i32_1 = arith.constant 0 : i32
    return %c0_i32, %c0_i32_0 : i32, i32
  }
  func.func @transform_9(%arg0: i32) -> (i32, i32, i32) {
    %c0_i32 = arith.constant 0 : i32
    %c0_i32_0 = arith.constant 0 : i32
    %c0_i32_1 = arith.constant 0 : i32
    %c0_i32_2 = arith.constant 0 : i32
    return %c0_i32, %c0_i32_0, %c0_i32_1 : i32, i32, i32
  }
  func.func @transform_10(%arg0: i32) -> (i32, i32) {
    %c0_i32 = arith.constant 0 : i32
    %c0_i32_0 = arith.constant 0 : i32
    %c0_i32_1 = arith.constant 0 : i32
    return %c0_i32, %c0_i32_0 : i32, i32
  }
  func.func @transform_11(%arg0: i32) -> (i32, i32, i32) {
    %c0_i32 = arith.constant 0 : i32
    %c0_i32_0 = arith.constant 0 : i32
    %c0_i32_1 = arith.constant 0 : i32
    %c0_i32_2 = arith.constant 0 : i32
    return %c0_i32, %c0_i32_0, %c0_i32_1 : i32, i32, i32
  }
  func.func @transform_12(%arg0: i32) -> (i32, i32, i32) {
    %c0_i32 = arith.constant 0 : i32
    %c0_i32_0 = arith.constant 0 : i32
    %c0_i32_1 = arith.constant 0 : i32
    return %arg0, %c0_i32, %c0_i32_0 : i32, i32, i32
  }
}

</mosaic_0001>

<bundles_post_ra>
// kernel: example_net4_forward.1
= control target key start
LH: loop header
LB: loop body
LE: loop exit
PB: predicated region body
PF: predicated region fallthrough
CT: control target
= control target key end

     0   :  { %17 = vsyncpa [#allocation3], 0  ;;  %s4645_s0 = inlined_call_operand.vmem [shape: bf16[2,32,96], index: 0, kind: input, shape index: {}]   ;;  %s4646_s1 = inlined_call_operand.vmem [shape: bf16[5,96,224], index: 1, kind: input, shape index: {}]   ;;  %s4647_s2 = inlined_call_operand.vmem [shape: f32[1,224], index: 2, kind: input, shape index: {}]   ;;  %s4648_s3 = inlined_call_operand.vmem [shape: bf16[14,28], index: 3, kind: input, shape index: {}]   ;;  %s4649_s4 = inlined_call_operand.vmem [shape: bf16[224,112], index: 4, kind: input, shape index: {}]   ;;  %s4650_s5 = inlined_call_operand.vmem [shape: bf16[3,112,192], index: 5, kind: input, shape index: {}]   ;;  %s4651_s6 = inlined_call_operand.vmem [shape: f32[1,192], index: 6, kind: input, shape index: {}]   ;;  %s4652_s7 = inlined_call_operand.vmem [shape: bf16[6,12], index: 7, kind: input, shape index: {}]   ;;  %s4653_s8 = inlined_call_operand.vmem [shape: bf16[192,96], index: 8, kind: input, shape index: {}]   ;;  %s4654_s9 = inlined_call_operand.vmem [shape: bf16[3,96,128], index: 9, kind: input, shape index: {}]   ;;  %s4655_s10 = inlined_call_operand.vmem [shape: f32[1,128], index: 10, kind: input, shape index: {}]   ;;  %s4656_s11 = inlined_call_operand.vmem [shape: bf16[4,128,10], index: 11, kind: input, shape index: {}]   ;;  %s4657_s12 = inlined_call_operand.hbm [shape: f32[2,1,10], index: 12, kind: output, shape index: {}]  }
   0x1   :  { %19 = vsyncpa [#allocation3 + $0x1], 0  ;;  %s3814_s21 = smov 0   ;;  %s3816_s22 = smov 0  }
   0x2   :  { %s3818_s23 = smov 0   ;;  %s3820_s24 = smov 0  }
   0x3 LB: > { %4662 = sst [smem:[#allocation5_spill]] %s3739_s23  ;;  %s3835_s25 = sadd.s32 4294967295, %s3743_s24   ;;  %s3743_s24 = sphi %s3820_s24, %s4669_s24   ;;  %s3739_s23 = sphi %s3818_s23, %s4671_s23   ;;  %s3735_s22 = sphi %s3816_s22, %s4673_s22   ;;  %s3731_s21 = sphi %s3814_s21, %s4672_s21  }
   0x4   : > { %s2808_s26 = sadd.s32 4294967294, %s3743_s24   ;;  %s3839_s27 = sadd.s32 1, %s3743_s24  }
   0x5   : > { %4663 = sst [smem:[#allocation6_spill]] %s3839_s27  ;;  %s289_s28 = sadd.s32 1, %s3739_s23 }
   0x6   : > { %s286_s29 = ssub.s32 %s3743_s24, %s3839_s27  ;;  %p299_p0 = scmp.ne.s32.totalorder %s3739_s23, %s3735_s22 }
   0x7   : > { %p287_p1 = scmp.eq.s32.totalorder %s286_s29, 0  ;;  %p300_p2 = scmp.eq.s32.totalorder %s3835_s25, 1 }
   0x8   : > { %p305_p3 = scmp.ne.s32.totalorder %s3735_s22, %s3731_s21  ;;  %p306_p4 = scmp.eq.s32.totalorder %s2808_s26, 1 }
   0x9   : > { %s3850_s30 = scalar_select %p287_p1, %s3739_s23, %s289_s28  }
   0xa   : > { %p3852_p5 = por %p300_p2, %p299_p0  ;;  %p3856_p6 = por %p306_p4, %p305_p3 }
   0xb   : > { %4664 = sst [smem:[#allocation7_spill]] %s3850_s30  ;;  %p2811_p7 = scmp.ge.s32.totalorder %s3743_s24, 1 }
   0xc   : > { %s4666_s14 = scalar_select %p3856_p6, 1, 0 }
   0xd   : > { %p365_p8 = scmp.lt.s32.totalorder %s3743_s24, 3 }
   0xe   : > { %4667 = sst [smem:[#allocation8_spill]] %s4666_s14 }
   0xf   : > { %p366_p9 = pnand %p2811_p7, %p365_p8 }
  0x10   : > { %v3449_v0 = vld [vmem:[%s4646_s1 + $0x64] ss:$8 sps:$4 sm:$0xff] (!%p366_p9)   ;;  %p406_p10 = scmp.lt.s32.totalorder (!%p366_p9), %s3835_s25, 1  ;;  %v3451_v1 = vld [vmem:[%s4646_s1 + $0x60] ss:$8 sps:$4 sm:$0xff] (!%p366_p9)   ;;  %v3745_v2 = vmov (!%p366_p9), 0  }
  0x11   : > { %369 = sbr.rel (%p366_p9) target bundleno = 2099 (0x833), region = 68  ;;  %566 = vmatprep.mubr.bf16.mxu0 (!%p366_p9), %v3745_v2  ;;  %1222 = vmatprep.mubr.bf16.mxu1 (!%p366_p9), %v3745_v2  ;;  %v3452_v3 = vld [vmem:[%s4646_s1 + $0x74] ss:$8 sps:$4 sm:$0xff] (!%p366_p9)   ;;  %v3454_v4 = vld [vmem:[%s4646_s1 + $0x70] ss:$8 sps:$4 sm:$0xff] (!%p366_p9)   ;;  %vm1009_vm1 = vcmask (!%p366_p9), 1045504  }
  0x12   : > { %534 = vmatprep.subr.bf16.mxu0 (!%p366_p9), %v3449_v0  ;;  %v3455_v5 = vld [vmem:[%s4646_s1 + $0x84] ss:$8 sps:$4 sm:$0xff] (!%p366_p9)   ;;  %v3457_v6 = vld [vmem:[%s4646_s1 + $0x80] ss:$8 sps:$4 sm:$0xff] (!%p366_p9)   ;;  %v3458_v7 = vld [vmem:[%s4646_s1 + $0x94] ss:$8 sps:$4 sm:$0xff] (!%p366_p9)  }
  0x13   : > { %535 = vmatpush1.bf16.msra.mxu0 (!%p366_p9), %v3451_v1  ;;  %v3460_v8 = vld [vmem:[%s4646_s1 + $0x90] ss:$8 sps:$4 sm:$0xff] (!%p366_p9)   ;;  %v3461_v11 = vld [vmem:[%s4646_s1 + $0xa4] ss:$8 sps:$4 sm:$0xff] (!%p366_p9)   ;;  %v3463_v18 = vld [vmem:[%s4646_s1 + $0xa0] ss:$8 sps:$4 sm:$0xff] (!%p366_p9)  }
  0x14   : > { %536 = vmatprep.subr.bf16.mxu0 (!%p366_p9), %v3452_v3  ;;  %v3464_v21 = vld [vmem:[%s4646_s1 + $0xb4] ss:$8 sps:$4 sm:$0xff] (!%p366_p9)   ;;  %vm861_vm0 = vsmask.f32 (!%p366_p9), 6400  ;;  %v3466_v26 = vld [vmem:[%s4646_s1 + $0xb0] ss:$8 sps:$4 sm:$0xff] (!%p366_p9)  }
  0x15   : > { %v3469_v30 = vld [vmem:[%s4646_s1 + $0x4] ss:$8 sps:$4 sm:$0xff] (!%p366_p9)   ;;  %vm451_vm2 = vsmask.f32 (!%p366_p9), 7424  ;;  %v3467_v33 = vld [vmem:[%s4646_s1] ss:$8 sps:$4 sm:$0xff] (!%p366_p9)  }
  0x16   : > { %vm527_vm3 = vcmask (!%p366_p9), 785408   ;;  %v3474_v35 = vld [vmem:[%s4646_s1 + $0x14] ss:$8 sps:$4 sm:$0xff] (!%p366_p9)   ;;  %v3472_v36 = vld [vmem:[%s4646_s1 + $0x10] ss:$8 sps:$4 sm:$0xff] (!%p366_p9)   ;;  %vm717_vm4 = vcmask (!%p366_p9), 1046528  }
  0x17   : > { %537 = vmatpush1.bf16.msra.mxu0 (!%p366_p9), %v3454_v4  ;;  %v3477_v37 = vld [vmem:[%s4646_s1 + $0x24] ss:$8 sps:$4 sm:$0xff] (!%p366_p9)   ;;  %v3475_v39 = vld [vmem:[%s4646_s1 + $0x20] ss:$8 sps:$4 sm:$0xff] (!%p366_p9)   ;;  %v3480_v40 = vld [vmem:[%s4646_s1 + $0x34] ss:$8 sps:$4 sm:$0xff] (!%p366_p9)  }
  0x18   : > { %s407_s26 = scalar_select %p406_p10, %s3835_s25, 1  ;;  %538 = vmatprep.subr.bf16.mxu0 %v3455_v5  ;;  %v3478_v41 = vld [vmem:[%s4646_s1 + $0x30] ss:$8 sps:$4 sm:$0xff]   ;;  %v3483_v42 = vld [vmem:[%s4646_s1 + $0x44] ss:$8 sps:$4 sm:$0xff]   ;;  %vm1179_vm5 = vcmask 228352  }
  0x19   : > { %v3481_v43 = vld [vmem:[%s4646_s1 + $0x40] ss:$8 sps:$4 sm:$0xff]   ;;  %v3486_v44 = vld [vmem:[%s4646_s1 + $0x54] ss:$8 sps:$4 sm:$0xff]   ;;  %v3484_v45 = vld [vmem:[%s4646_s1 + $0x50] ss:$8 sps:$4 sm:$0xff]  }
  0x1a   : > { %s3169_s17 = sshll.u32 %s407_s26, 4  ;;  %v3489_v46 = vld [vmem:[%s4646_s1 + $0xc4] ss:$8 sps:$4 sm:$0xff]   ;;  %v3487_v47 = vld [vmem:[%s4646_s1 + $0xc0] ss:$8 sps:$4 sm:$0xff]   ;;  %vm1498_vm6 = vcmask 916480  }
  0x1b   : > { %s410_s20 = scalar_lea.vmem %s4645_s0, %s3169_s17  ;;  %539 = vmatpush1.bf16.msra.mxu0 %v3457_v6  ;;  %v3492_v48 = vld [vmem:[%s4646_s1 + $0xd4] ss:$8 sps:$4 sm:$0xff]   ;;  %v3490_v49 = vld [vmem:[%s4646_s1 + $0xd0] ss:$8 sps:$4 sm:$0xff]   ;;  %v3495_v50 = vld [vmem:[%s4646_s1 + $0xe4] ss:$8 sps:$4 sm:$0xff]  }
  0x1c   : > { %v3893_v9 = vld [vmem:[%s410_s20] sm:$0xff]   ;;  %v3895_v10 = vld [vmem:[%s410_s20 + $0x8] sm:$0xff]   ;;  %540 = vmatprep.subr.bf16.mxu0 %v3458_v7  ;;  %v3498_v52 = vld [vmem:[%s4646_s1 + $0xf4] ss:$8 sps:$4 sm:$0xff]   ;;  %vm1820_vm7 = vcmask 97280   ;;  %vm1969_vm8 = vcmask 523264  }
  0x1d   : > { %v453_v12 = vshrl.u32 %v3893_v9, 16  ;;  %v455_v13 = vshll.u32 %v3893_v9, 16  ;;  %v460_v14 = vshll.u32 %v3895_v10, 16  ;;  %v464_v17 = vshrl.u32 %v3895_v10, 16  ;;  %v3493_v51 = vld [vmem:[%s4646_s1 + $0xe0] ss:$8 sps:$4 sm:$0xff]  }
  0x1e   : > { %v1010_v25 = vrot.slane %v3893_v9, 2  ;;  %v1011_v29 = vrot.slane %v3895_v10, 2  ;;  %v3496_v53 = vld [vmem:[%s4646_s1 + $0xf0] ss:$8 sps:$4 sm:$0xff]   ;;  %v3501_v54 = vld [vmem:[%s4646_s1 + $0x104] ss:$8 sps:$4 sm:$0xff]  }
  0x1f   : > { %v862_v15 = vrot.slane %v453_v12, 1  ;;  %v863_v16 = vrot.slane %v455_v13, 2  ;;  %541 = vmatpush1.bf16.msra.mxu0 %v3460_v8  ;;  %v457_v19 = vrot.slane %v455_v13, 1  ;;  %v866_v20 = vrot.slane %v460_v14, 2  ;;  %v3499_v55 = vld [vmem:[%s4646_s1 + $0x100] ss:$8 sps:$4 sm:$0xff]  }
  0x20   : > { %542 = vmatprep.subr.bf16.mxu0 %v3461_v11  ;;  %v865_v22 = vrot.slane %v464_v17, 1  ;;  %v462_v28 = vrot.slane %v460_v14, 1  ;;  %v3926_v32 = vsel %vm1009_vm1, %v1010_v25, %v1011_v29  ;;  %v3504_v56 = vld [vmem:[%s4646_s1 + $0x114] ss:$8 sps:$4 sm:$0xff]   ;;  %v3502_v57 = vld [vmem:[%s4646_s1 + $0x110] ss:$8 sps:$4 sm:$0xff]  }
  0x21   : > { %v864_v23 = vor.u32 %v863_v16, %v862_v15  ;;  %v458_v27 = vor.u32 %v457_v19, %v453_v12  ;;  %v3507_v58 = vld [vmem:[%s4646_s1 + $0x124] ss:$8 sps:$4 sm:$0xff]   ;;  %v718_v59 = vrot.slane %v3893_v9, 1  ;;  %v719_v60 = vrot.slane %v3895_v10, 1  ;;  %v3505_v61 = vld [vmem:[%s4646_s1 + $0x120] ss:$8 sps:$4 sm:$0xff]  }
  0x22   : > { %v3910_v24 = vor.u32 %v866_v20, %v865_v22  ;;  %v466_v38 = vor.u32 %v464_v17, %v462_v28  ;;  %v3510_v62 = vld [vmem:[%s4646_s1 + $0x134] ss:$8 sps:$4 sm:$0xff]   ;;  %v3508_v0 = vld [vmem:[%s4646_s1 + $0x130] ss:$8 sps:$4 sm:$0xff]   ;;  %v3513_v1 = vld [vmem:[%s4646_s1 + $0x144] ss:$8 sps:$4 sm:$0xff]  }
  0x23   : > { %543 = vmatpush1.bf16.msra.mxu0 %v3463_v18  ;;  %v463_v34 = vsel %vm451_vm2, %v458_v27, %v462_v28  ;;  %v720_v63 = vsel %vm717_vm4, %v718_v59, %v719_v60  ;;  %v3511_v3 = vld [vmem:[%s4646_s1 + $0x140] ss:$8 sps:$4 sm:$0xff]   ;;  %v3516_v4 = vld [vmem:[%s4646_s1 + $0x154] ss:$8 sps:$4 sm:$0xff]   ;;  %v3514_v5 = vld [vmem:[%s4646_s1 + $0x150] ss:$8 sps:$4 sm:$0xff]  }
  0x24   : > { %544 = vmatprep.subr.bf16.mxu0 %v3464_v21  ;;  %v3921_v31 = vsel %vm861_vm0, %v864_v23, %v3910_v24  ;;  %v3519_v6 = vld [vmem:[%s4646_s1 + $0x164] ss:$8 sps:$4 sm:$0xff]   ;;  %v3517_v7 = vld [vmem:[%s4646_s1 + $0x160] ss:$8 sps:$4 sm:$0xff]   ;;  %v3522_v8 = vld [vmem:[%s4646_s1 + $0x174] ss:$8 sps:$4 sm:$0xff]  }
  0x25   : > { %v3525_v11 = vld [vmem:[%s4646_s1 + $0x184] ss:$8 sps:$4 sm:$0xff]   ;;  %v3523_v12 = vld [vmem:[%s4646_s1 + $0x180] ss:$8 sps:$4 sm:$0xff]   ;;  %v3528_v13 = vld [vmem:[%s4646_s1 + $0x194] ss:$8 sps:$4 sm:$0xff]  }
  0x26   : > { %v3526_v14 = vld [vmem:[%s4646_s1 + $0x190] ss:$8 sps:$4 sm:$0xff]   ;;  %v3531_v15 = vld [vmem:[%s4646_s1 + $0x1a4] ss:$8 sps:$4 sm:$0xff]   ;;  %v3529_v16 = vld [vmem:[%s4646_s1 + $0x1a0] ss:$8 sps:$4 sm:$0xff]  }
  0x27   : > { %545 = vmatpush1.bf16.msra.mxu0 %v3466_v26  ;;  %v3534_v17 = vld [vmem:[%s4646_s1 + $0x1b4] ss:$8 sps:$4 sm:$0xff]   ;;  %v3532_v18 = vld [vmem:[%s4646_s1 + $0x1b0] ss:$8 sps:$4 sm:$0xff]   ;;  %v3537_v19 = vld [vmem:[%s4646_s1 + $0x1c4] ss:$8 sps:$4 sm:$0xff]  }
  0x28   : > { %651 = vmatprep.subr.bf16.mxu0 %v3469_v30  ;;  %v3535_v20 = vld [vmem:[%s4646_s1 + $0x1c0] ss:$8 sps:$4 sm:$0xff]   ;;  %v3540_v21 = vld [vmem:[%s4646_s1 + $0x1d4] ss:$8 sps:$4 sm:$0xff]   ;;  %v3538_v22 = vld [vmem:[%s4646_s1 + $0x1d0] ss:$8 sps:$4 sm:$0xff]  }
  0x29   : > { %v3542_v23 = vld [vmem:[%s4649_s4] sm:$0xff]   ;;  %v3544_v25 = vld [vmem:[%s4649_s4 + $0x10] sm:$0xff]   ;;  %v3547_v27 = vld [vmem:[%s4649_s4 + $0x28] sm:$0xff]   ;;  %vm3747_vm9 = vmmov 0   ;;  %s404_s29 = sand.u32 1, %s3735_s22   ;;  %s3166_s30 = sshll.u32 %s3835_s25, 4 }
  0x2a   : > { %2840 = vmatmul.mubr.msk.bf16.vlgmr.msra.gmra.mrb[0].mxu0 %vm527_vm3, %v463_v34  ;;  %v3546_v26 = vld [vmem:[%s4649_s4 + $0x20] sm:$0xff]   ;;  %v3548_v28 = vld [vmem:[%s4649_s4 + $0x30] sm:$0xff]   ;;  %v1142_v34 = vlaneseq  ;;  %s405_s26 = scalar_lea.vmem [#allocation2], %s404_s29  ;;  %vm2738_vm10 = vcmask 73728   ;;  %s4603_s15 = scalar_lea.hbm %s4657_s12, %s3166_s30 }
  0x2b   : > { %652 = vmatpush1.bf16.msra.mxu0 %v3467_v33  ;;  %576 = vmatprep.mubr.bf16.mxu0 %v3745_v2  ;;  %v3550_v30 = vld [vmem:[%s4649_s4 + $0x40] sm:$0xff]   ;;  %v3553_v33 = vld [vmem:[%s4649_s4 + $0x58] sm:$0xff]   ;;  %s2753_s23 = sshll.u32 %s405_s26, 4  ;;  %s2741_s16 = scalar_lea.sflag [#allocation3], %s404_s29  ;;  %s4605_s23 = int_to_ptr.vmem [resolvable:$true] %s2753_s23 }
  0x2c   : > { %653 = vmatprep.subr.bf16.mxu0 %v3474_v35  ;;  %v4146_v35 = vshrl.u32 %v1142_v34, 7  ;;  %s3681_s17 = scalar_lea.vmem %s4605_s23, 16  ;;  %s3748_s25 = smov [#allocation2]  }
  0x2d   : > { %p3682_p11 = scmp.ne.s32.totalorder %s4605_s23, %s3681_s17  ;;  %s3685_s18 = sshll.u32 %s3748_s25, 4  ;;  %s3686_s18 = int_to_ptr.vmem [resolvable:$false] %s3685_s18 }
  0x2e   : > { %s3687_s19 = scalar_lea.vmem %s3686_s18, 32  ;;  %p3688_p0 = scmp.lt.s32.totalorder %s4605_s23, %s3686_s18 }
  0x2f   : > { %654 = vmatpush1.bf16.msra.mxu0 %v3472_v36  ;;  %v1144_v36 = vsub.s32 0, %v4146_v35  ;;  %p3683_p12 = pnand %p3682_p11, %p3852_p5  ;;  %p3689_p1 = scmp.lt.s32.totalorder %s3687_s19, %s3681_s17 }
  0x30   : > { %655 = vmatprep.subr.bf16.mxu0 %v3477_v37  ;;  %v1140_v37 = vld [vmem:[%s4647_s2] sm:$0x3] }
  0x31   : > { %p3684_p13 = pneg %p3683_p12  ;;  %p3690_p2 = por %p3689_p1, %p3688_p0 }
  0x32   : > { %2841 = vmatmul.mubr.msk.bf16.gmra.mrb[4].mxu0 %vm527_vm3, %v466_v38  ;;  %v1148_v38 = vsub.s32 1, %v4146_v35  ;;  %v1819_v35 = vld [vmem:[%s4652_s7] sm:$0x7] }
  0x33   : > { %656 = vmatpush1.bf16.msra.mxu0 %v3475_v39  ;;  %683 = vmatprep.mubr.bf16.mxu0 %v3745_v2  ;;  %v1145_v39 = vrot.slane %v1140_v37, %v1144_v36  ;;  %p3691_p3 = pnand %p3690_p2, %p3684_p13 }
  0x34   : > { %657 = vmatprep.subr.bf16.mxu0 %v3480_v40  ;;  %v1149_v40 = vrot.slane %v1140_v37, %v1148_v38 }
  0x37   : > { %658 = vmatpush1.bf16.msra.mxu0 %v3478_v41 }
  0x38   : > { %659 = vmatprep.subr.bf16.mxu0 %v3483_v42 }
  0x3b   : > { %660 = vmatpush1.bf16.msra.mxu0 %v3481_v43 }
  0x3c   : > { %661 = vmatprep.subr.bf16.mxu0 %v3486_v44 }
  0x3f   : > { %662 = vmatpush1.bf16.msra.mxu0 %v3484_v45 }
  0x40   : > { %787 = vmatprep.subr.bf16.mxu0 %v3489_v46 }
  0x42   : > { %2854 = vmatmul.mubr.msk.bf16.vlgmr.msra.gmra.mrb[0].mxu0 %vm527_vm3, %v3893_v9  ;;  %v3520_v9 = vld [vmem:[%s4646_s1 + $0x170] ss:$8 sps:$4 sm:$0xff]  }
  0x43   : > { %788 = vmatpush1.bf16.msra.mxu0 %v3487_v47  ;;  %693 = vmatprep.mubr.bf16.mxu0 %v3745_v2 }
  0x44   : > { %789 = vmatprep.subr.bf16.mxu0 %v3492_v48 }
  0x47   : > { %790 = vmatpush1.bf16.msra.mxu0 %v3490_v49 }
  0x48   : > { %791 = vmatprep.subr.bf16.mxu0 %v3495_v50 }
  0x4a   : > { %2855 = vmatmul.mubr.msk.bf16.gmra.mrb[4].mxu0 %vm527_vm3, %v3895_v10  ;;  %v3545_v10 = vld [vmem:[%s4649_s4 + $0x18] sm:$0xff]  }
  0x4b   : > { %792 = vmatpush1.bf16.msra.mxu0 %v3493_v51  ;;  %819 = vmatprep.mubr.bf16.mxu0 %v3745_v2 }
  0x4c   : > { %793 = vmatprep.subr.bf16.mxu0 %v3498_v52 }
  0x4f   : > { %794 = vmatpush1.bf16.msra.mxu0 %v3496_v53 }
  0x50   : > { %795 = vmatprep.subr.bf16.mxu0 %v3501_v54 }
  0x53   : > { %796 = vmatpush1.bf16.msra.mxu0 %v3499_v55 }
  0x54   : > { %797 = vmatprep.subr.bf16.mxu0 %v3504_v56 }
  0x57   : > { %798 = vmatpush1.bf16.msra.mxu0 %v3502_v57 }
  0x58   : > { %935 = vmatprep.subr.bf16.mxu0 %v3507_v58 }
  0x5a   : > { %2880 = vmatmul.mubr.msk.bf16.vlgmr.msra.gmra.mrb[0].mxu0 %vm527_vm3, %v720_v63 }
  0x5b   : > { %936 = vmatpush1.bf16.msra.mxu0 %v3505_v61  ;;  %829 = vmatprep.mubr.bf16.mxu0 %v3745_v2 }
  0x5c   : > { %937 = vmatprep.subr.bf16.mxu0 %v3510_v62 }
  0x5f   : > { %938 = vmatpush1.bf16.msra.mxu0 %v3508_v0 }
  0x60   : > { %939 = vmatprep.subr.bf16.mxu0 %v3513_v1 }
  0x62   : > { %2881 = vmatmul.mubr.msk.bf16.gmra.mrb[4].mxu0 %vm527_vm3, %v719_v60 }
  0x63   : > { %940 = vmatpush1.bf16.msra.mxu0 %v3511_v3  ;;  %967 = vmatprep.mubr.bf16.mxu0 %v3745_v2 }
  0x64   : > { %941 = vmatprep.subr.bf16.mxu0 %v3516_v4 }
  0x67   : > { %942 = vmatpush1.bf16.msra.mxu0 %v3514_v5 }
  0x68   : > { %943 = vmatprep.subr.bf16.mxu0 %v3519_v6 }
  0x6b   : > { %944 = vmatpush1.bf16.msra.mxu0 %v3517_v7  ;;  %v3541_v7 = vld [vmem:[%s4648_s3] sm:$0x7f]  }
  0x6c   : > { %945 = vmatprep.subr.bf16.mxu0 %v3522_v8  ;;  %v3554_v8 = vld [vmem:[%s4649_s4 + $0x60] sm:$0xff]  }
  0x6f   : > { %946 = vmatpush1.bf16.msra.mxu0 %v3520_v9  ;;  %v3555_v9 = vld [vmem:[%s4649_s4 + $0x68] sm:$0xff]  }
  0x70   : > { %1079 = vmatprep.subr.bf16.mxu0 %v3525_v11  ;;  %v3556_v11 = vld [vmem:[%s4650_s5 + $0x70] ss:$8 sps:$4 sm:$0xff]  }
  0x72   : > { %2906 = vmatmul.mubr.msk.bf16.vlgmr.msra.gmra.mrb[0].mxu0 %vm527_vm3, %v3921_v31  ;;  %v3551_v31 = vld [vmem:[%s4649_s4 + $0x48] sm:$0xff]  }
  0x73   : > { %1080 = vmatpush1.bf16.msra.mxu0 %v3523_v12  ;;  %977 = vmatprep.mubr.bf16.mxu0 %v3745_v2  ;;  %v3558_v12 = vld [vmem:[%s4650_s5 + $0x74] ss:$8 sps:$4 sm:$0xff]  }
  0x74   : > { %1081 = vmatprep.subr.bf16.mxu0 %v3528_v13  ;;  %v3561_v13 = vld [vmem:[%s4650_s5 + $0x84] ss:$8 sps:$4 sm:$0xff]  }
  0x77   : > { %1082 = vmatpush1.bf16.msra.mxu0 %v3526_v14  ;;  %v3559_v14 = vld [vmem:[%s4650_s5 + $0x80] ss:$8 sps:$4 sm:$0xff]  }
  0x78   : > { %1083 = vmatprep.subr.bf16.mxu0 %v3531_v15  ;;  %v3564_v15 = vld [vmem:[%s4650_s5 + $0x94] ss:$8 sps:$4 sm:$0xff]  }
  0x7a   : > { %2907 = vmatmul.mubr.msk.bf16.gmra.mrb[4].mxu0 %vm527_vm3, %v3910_v24  ;;  %v3543_v24 = vld [vmem:[%s4649_s4 + $0x8] sm:$0xff]  }
  0x7b   : > { %1084 = vmatpush1.bf16.msra.mxu0 %v3529_v16  ;;  %1111 = vmatprep.mubr.bf16.mxu0 %v3745_v2  ;;  %v3562_v16 = vld [vmem:[%s4650_s5 + $0x90] ss:$8 sps:$4 sm:$0xff]  }
  0x7c   : > { %1085 = vmatprep.subr.bf16.mxu0 %v3534_v17  ;;  %v3567_v17 = vld [vmem:[%s4650_s5 + $0xa4] ss:$8 sps:$4 sm:$0xff]  }
  0x7f   : > { %1086 = vmatpush1.bf16.msra.mxu0 %v3532_v18  ;;  %v3565_v18 = vld [vmem:[%s4650_s5 + $0xa0] ss:$8 sps:$4 sm:$0xff]  }
  0x80   : > { %1087 = vmatprep.subr.bf16.mxu0 %v3537_v19  ;;  %v3570_v19 = vld [vmem:[%s4650_s5 + $0xb4] ss:$8 sps:$4 sm:$0xff]  }
  0x83   : > { %1088 = vmatpush1.bf16.msra.mxu0 %v3535_v20  ;;  %v3568_v20 = vld [vmem:[%s4650_s5 + $0xb0] ss:$8 sps:$4 sm:$0xff]  }
  0x84   : > { %1089 = vmatprep.subr.bf16.mxu0 %v3540_v21 }
  0x87   : > { %1090 = vmatpush1.bf16.msra.mxu0 %v3538_v22 }
  0x88   : > { %1350 = vmatprep.subr.bf16.mxu0 %v3745_v2 }
  0x8a   : > { %2932 = vmatmul.mubr.msk.bf16.vlgmr.msra.gmra.mrb[0].mxu0 %vm527_vm3, %v3926_v32  ;;  %v3552_v32 = vld [vmem:[%s4649_s4 + $0x50] sm:$0xff]  }
  0x8b   : > { %1121 = vmatprep.mubr.bf16.mxu0 %v3745_v2  ;;  %1351 = vmatpush1.bf16.msra.mxu0 %v3542_v23 }
  0x8c   : > { %1352 = vmatprep.subr.bf16.mxu0 %v3745_v2 }
  0x8f   : > { %1353 = vmatpush1.bf16.msra.mxu0 %v3543_v24 }
  0x90   : > { %1354 = vmatprep.subr.bf16.mxu0 %v3745_v2 }
  0x92   : > { %2933 = vmatmul.mubr.msk.bf16.gmra.mrb[4].mxu0 %vm527_vm3, %v1011_v29  ;;  %v3549_v29 = vld [vmem:[%s4649_s4 + $0x38] sm:$0xff]  }
  0x93   : > { %1355 = vmatpush1.bf16.msra.mxu0 %v3544_v25 }
  0x94   : > { %1356 = vmatprep.subr.bf16.mxu0 %v3745_v2 }
  0x97   : > { %1357 = vmatpush1.bf16.msra.mxu0 %v3545_v10 }
  0x98   : > { %1358 = vmatprep.subr.bf16.mxu0 %v3745_v2 }
  0x9b   : > { %1359 = vmatpush1.bf16.msra.mxu0 %v3546_v26  ;;  %v3573_v26 = vld [vmem:[%s4650_s5 + $0xc4] ss:$8 sps:$4 sm:$0xff]  }
  0x9c   : > { %1360 = vmatprep.subr.bf16.mxu0 %v3745_v2 }
  0x9f   : > { %1361 = vmatpush1.bf16.msra.mxu0 %v3547_v27  ;;  %v3571_v27 = vld [vmem:[%s4650_s5 + $0xc0] ss:$8 sps:$4 sm:$0xff]  }
  0xa0   : > { %1362 = vmatprep.subr.bf16.mxu0 %v3745_v2 }
  0xa3   : > { %1363 = vmatpush1.bf16.msra.mxu0 %v3548_v28  ;;  %v3576_v28 = vld [vmem:[%s4650_s5 + $0xd4] ss:$8 sps:$4 sm:$0xff]  }
  0xa4   : > { %1364 = vmatprep.subr.bf16.mxu0 %v3745_v2 }
  0xa7   : > { %1365 = vmatpush1.bf16.msra.mxu0 %v3549_v29  ;;  %v3574_v29 = vld [vmem:[%s4650_s5 + $0xd0] ss:$8 sps:$4 sm:$0xff]  }
  0xa8   : > { %1366 = vmatprep.subr.bf16.mxu0 %v3745_v2 }
  0xab   : > { %1367 = vmatpush1.bf16.msra.mxu0 %v3550_v30  ;;  %v3579_v30 = vld [vmem:[%s4650_s5 + $0x4] ss:$8 sps:$4 sm:$0xff]  }
  0xac   : > { %1368 = vmatprep.subr.bf16.mxu0 %v3745_v2 }
  0xaf   : > { %1369 = vmatpush1.bf16.msra.mxu0 %v3551_v31 }
  0xb0   : > { %1370 = vmatprep.subr.bf16.mxu0 %v3745_v2 }
  0xb3   : > { %1371 = vmatpush1.bf16.msra.mxu0 %v3552_v32 }
  0xb4   : > { %1372 = vmatprep.subr.bf16.mxu0 %v3745_v2 }
  0xb7   : > { %1373 = vmatpush1.bf16.msra.mxu0 %v3553_v33 }
  0xb8   : > { %1374 = vmatprep.subr.bf16.mxu0 %v3745_v2 }
  0xbb   : > { %1375 = vmatpush1.bf16.msra.mxu0 %v3554_v8  ;;  %v1797_v8 = vld [vmem:[%s4651_s6] sm:$0x3] }
  0xbc   : > { %1376 = vmatprep.subr.bf16.mxu0 %v3745_v2 }
  0xbf   : > { %1377 = vmatpush1.bf16.msra.mxu0 %v3555_v9  ;;  %v1802_v9 = vrot.slane %v1797_v8, %v1144_v36  ;;  %v3619_v36 = vld [vmem:[%s4653_s8] sm:$0xff]  }
 0x15d   : > { %v1113_v41 = vpop.f32.mrb[0].mxu0 }
 0x15e   : > { %v1152_v42 = vadd.f32 %v1145_v39, %v1113_v41  ;;  %v1115_v43 = vpop.f32.mrb[1].mxu0 }
 0x15f   : > { %v1153_v44 = vadd.f32 %v1149_v40, %v1115_v43  ;;  %v1117_v45 = vpop.f32.mrb[2].mxu0 }
 0x160   : > { %v1154_v46 = vadd.f32 %v1145_v39, %v1117_v45  ;;  %v1119_v47 = vpop.f32.mrb[3].mxu0  ;;  %v1160_v49 = vmax.f32 %v1152_v42, 0.0  ;;  %v3577_v42 = vld [vmem:[%s4650_s5] ss:$8 sps:$4 sm:$0xff]   ;;  %v3580_v45 = vld [vmem:[%s4650_s5 + $0x10] ss:$8 sps:$4 sm:$0xff]  }
 0x161   : > { %v1155_v48 = vadd.f32 %v1149_v40, %v1119_v47  ;;  %v1161_v51 = vmax.f32 %v1153_v44, 0.0  ;;  %v3582_v44 = vld [vmem:[%s4650_s5 + $0x14] ss:$8 sps:$4 sm:$0xff]   ;;  %v3583_v47 = vld [vmem:[%s4650_s5 + $0x20] ss:$8 sps:$4 sm:$0xff]  }
 0x162   : > { %v1162_v50 = vmax.f32 %v1154_v46, 0.0  ;;  %v3585_v46 = vld [vmem:[%s4650_s5 + $0x24] ss:$8 sps:$4 sm:$0xff]  }
 0x163   : > { %v1163_v52 = vmax.f32 %v1155_v48, 0.0  ;;  %v3588_v48 = vld [vmem:[%s4650_s5 + $0x34] ss:$8 sps:$4 sm:$0xff]  }
 0x164   : > { %v1168_v53 = vpack.c.bf16 %v1162_v50, %v1160_v49  ;;  %v3586_v49 = vld [vmem:[%s4650_s5 + $0x30] ss:$8 sps:$4 sm:$0xff]   ;;  %v3591_v50 = vld [vmem:[%s4650_s5 + $0x44] ss:$8 sps:$4 sm:$0xff]  }
 0x165   : > { %v1123_v54 = vpop.f32.mrb[4].mxu0  ;;  %v1169_v55 = vpack.c.bf16 %v1163_v52, %v1161_v51  ;;  %v3589_v51 = vld [vmem:[%s4650_s5 + $0x40] ss:$8 sps:$4 sm:$0xff]   ;;  %v3594_v52 = vld [vmem:[%s4650_s5 + $0x54] ss:$8 sps:$4 sm:$0xff]  }
 0x166   : > { %v1156_v56 = vadd.f32 %v1145_v39, %v1123_v54  ;;  %v1125_v57 = vpop.f32.mrb[5].mxu0  ;;  %v3597_v54 = vld [vmem:[%s4650_s5 + $0x64] ss:$8 sps:$4 sm:$0xff]  }
 0x167   : > { %v1157_v58 = vadd.f32 %v1149_v40, %v1125_v57  ;;  %v1127_v59 = vpop.f32.mrb[6].mxu0  ;;  %1190 = vmatprep.subr.bf16.mxu1 %v1169_v55  ;;  %v3595_v55 = vld [vmem:[%s4650_s5 + $0x60] ss:$8 sps:$4 sm:$0xff]  }
 0x168   : > { %v1158_v60 = vadd.f32 %v1145_v39, %v1127_v59  ;;  %v1129_v61 = vpop.f32.mrb[7].mxu0  ;;  %1191 = vmatpush1.bf16.msra.mxu1 %v1168_v53  ;;  %v1164_v63 = vmax.f32 %v1156_v56, 0.0  ;;  %v3592_v53 = vld [vmem:[%s4650_s5 + $0x50] ss:$8 sps:$4 sm:$0xff]   ;;  %v3600_v56 = vld [vmem:[%s4650_s5 + $0xe4] ss:$8 sps:$4 sm:$0xff]  }
 0x169   : > { %v1159_v62 = vadd.f32 %v1149_v40, %v1129_v61  ;;  %v1165_v1 = vmax.f32 %v1157_v58, 0.0  ;;  %v3598_v57 = vld [vmem:[%s4650_s5 + $0xe0] ss:$8 sps:$4 sm:$0xff]   ;;  %v3603_v58 = vld [vmem:[%s4650_s5 + $0xf4] ss:$8 sps:$4 sm:$0xff]  }
 0x16a   : > { %v1166_v0 = vmax.f32 %v1158_v60, 0.0  ;;  %v3601_v59 = vld [vmem:[%s4650_s5 + $0xf0] ss:$8 sps:$4 sm:$0xff]   ;;  %v3606_v60 = vld [vmem:[%s4650_s5 + $0x104] ss:$8 sps:$4 sm:$0xff]  }
 0x16b   : > { %v1167_v3 = vmax.f32 %v1159_v62, 0.0  ;;  %v3604_v61 = vld [vmem:[%s4650_s5 + $0x100] ss:$8 sps:$4 sm:$0xff]   ;;  %v3609_v62 = vld [vmem:[%s4650_s5 + $0x114] ss:$8 sps:$4 sm:$0xff]  }
 0x16c   : > { %v1170_v4 = vpack.c.bf16 %v1166_v0, %v1164_v63  ;;  %v3607_v63 = vld [vmem:[%s4650_s5 + $0x110] ss:$8 sps:$4 sm:$0xff]   ;;  %v3612_v0 = vld [vmem:[%s4650_s5 + $0x124] ss:$8 sps:$4 sm:$0xff]  }
 0x16d   : > { %v1171_v5 = vpack.c.bf16 %v1167_v3, %v1165_v1  ;;  %v3610_v1 = vld [vmem:[%s4650_s5 + $0x120] ss:$8 sps:$4 sm:$0xff]   ;;  %v3615_v3 = vld [vmem:[%s4650_s5 + $0x134] ss:$8 sps:$4 sm:$0xff]  }
 0x16e   : > { %v1185_v6 = vsel %vm1009_vm1, %v1170_v4, 0  ;;  %v3613_v4 = vld [vmem:[%s4650_s5 + $0x130] ss:$8 sps:$4 sm:$0xff]  }
 0x16f   : > { %2935 = vmatprep.subr.msk.bf16.mxu1 %vm1009_vm1, %v1171_v5  ;;  %v3618_v5 = vld [vmem:[%s4650_s5 + $0x144] ss:$8 sps:$4 sm:$0xff]  }
 0x170   : > { %1193 = vmatpush1.bf16.msra.mxu1 %v1185_v6  ;;  %v3616_v6 = vld [vmem:[%s4650_s5 + $0x140] ss:$8 sps:$4 sm:$0xff]  }
 0x171   : > { %1502 = vmatprep.subr.bf16.mxu1 %v3558_v12 }
 0x173   : > { %2936 = vmatmul.mubr.msk.bf16.vlgmr.msra.gmra.mrb[0].mxu1 %vm1179_vm5, %v3541_v7 }
 0x174   : > { %1534 = vmatprep.mubr.bf16.mxu1 %v3745_v2  ;;  %1503 = vmatpush1.bf16.msra.mxu1 %v3556_v11  ;;  %v1806_v11 = vrot.slane %v1797_v8, %v1148_v38  ;;  %v3620_v38 = vld [vmem:[%s4653_s8 + $0x8] sm:$0xff]   ;;  %v3647_v8 = vld [vmem:[%s4654_s9 + $0x20] sm:$0xff]  }
 0x175   : > { %1504 = vmatprep.subr.bf16.mxu1 %v3561_v13 }
 0x178   : > { %1505 = vmatpush1.bf16.msra.mxu1 %v3559_v14 }
 0x179   : > { %1506 = vmatprep.subr.bf16.mxu1 %v3564_v15 }
 0x17c   : > { %1507 = vmatpush1.bf16.msra.mxu1 %v3562_v16 }
 0x17d   : > { %1508 = vmatprep.subr.bf16.mxu1 %v3567_v17 }
 0x180   : > { %1509 = vmatpush1.bf16.msra.mxu1 %v3565_v18 }
 0x181   : > { %1510 = vmatprep.subr.bf16.mxu1 %v3570_v19 }
 0x184   : > { %1511 = vmatpush1.bf16.msra.mxu1 %v3568_v20 }
 0x185   : > { %1512 = vmatprep.subr.bf16.mxu1 %v3573_v26  ;;  %v3621_v26 = vld [vmem:[%s4653_s8 + $0x10] sm:$0xff]  }
 0x188   : > { %1513 = vmatpush1.bf16.msra.mxu1 %v3571_v27  ;;  %v3622_v27 = vld [vmem:[%s4653_s8 + $0x18] sm:$0xff]  }
 0x189   : > { %1514 = vmatprep.subr.bf16.mxu1 %v3576_v28  ;;  %v3623_v28 = vld [vmem:[%s4653_s8 + $0x20] sm:$0xff]  }
 0x18c   : > { %1515 = vmatpush1.bf16.msra.mxu1 %v3574_v29  ;;  %v3624_v29 = vld [vmem:[%s4653_s8 + $0x28] sm:$0xff]  }
 0x18d   : > { %1617 = vmatprep.subr.bf16.mxu1 %v3579_v30  ;;  %v3625_v30 = vld [vmem:[%s4653_s8 + $0x30] sm:$0xff]  }
 0x246   : > { %v1224_v21 = vpop.f32.mrb[0].mxu1 }
 0x247   : > { %v1226_v22 = vpop.f32.mrb[1].mxu1 }
 0x248   : > { %v1228_v23 = vpop.f32.mrb[2].mxu1 }
 0x249   : > { %v1233_v24 = vpack.c.bf16 %v1228_v23, %v1224_v21  ;;  %v1230_v25 = vpop.f32.mrb[3].mxu1 }
 0x24a   : > { %v1234_v10 = vpack.c.bf16 %v1230_v25, %v1226_v22 }
 0x24c   : > { %2951 = vmatprep.mubr.msk.bf16.mxu0 %vm527_vm3, %v1234_v10 }
 0x24d   : > { %1383 = vmatmul.mubr.bf16.vlgmr.msra.gmra.mrb[8].mxu0 %v1233_v24 }
 0x24e   : > { %1862 = vmatprep.mubr.bf16.mxu0 %v3745_v2 }
 0x320   : > { %v1384_v31 = vpop.f32.mrb[8].mxu0 }
 0x321   : > { %v1386_v32 = vpop.f32.mrb[9].mxu0 }
 0x322   : > { %v1387_v33 = vpop.f32.mrb[10].mxu0  ;;  %v3627_v32 = vld [vmem:[%s4653_s8 + $0x40] sm:$0xff]  }
 0x323   : > { %v4217_v34 = vpack.c.bf16 %v1387_v33, %v1384_v31  ;;  %v1389_v37 = vpop.f32.mrb[11].mxu0  ;;  %v3626_v31 = vld [vmem:[%s4653_s8 + $0x38] sm:$0xff]   ;;  %v3628_v33 = vld [vmem:[%s4653_s8 + $0x48] sm:$0xff]  }
 0x324   : > { %v3630_v37 = vld [vmem:[%s4653_s8 + $0x58] sm:$0xff]  }
 0x325   : > { %v1424_v39 = vshll.u32 %v4217_v34, 16  ;;  %v1422_v40 = vshrl.u32 %v4217_v34, 16  ;;  %v1676_v7 = vrot.slane %v4217_v34, 1 }
 0x327   : > { %v1426_v41 = vrot.slane %v1424_v39, 1  ;;  %v3746_v39 = vmov 0.0  }
 0x329   : > { %v1427_v43 = vor.u32 %v1426_v41, %v1422_v40  ;;  %v3632_v40 = vld [vmem:[%s4654_s9 + $0x30] sm:$0xff]   ;;  %v3636_v41 = vld [vmem:[%s4654_s9 + $0x40] sm:$0xff]  }
 0x32b   : > { %2980 = vmatmul.mubr.msk.bf16.vlgmr.msra.gmra.mrb[4].mxu1 %vm1498_vm6, %v1427_v43 }
 0x32c   : > { %1618 = vmatpush1.bf16.msra.mxu1 %v3577_v42  ;;  %1649 = vmatprep.mubr.bf16.mxu1 %v3745_v2  ;;  %v3638_v42 = vld [vmem:[%s4654_s9 + $0x48] sm:$0xff]  }
 0x32d   : > { %1619 = vmatprep.subr.bf16.mxu1 %v3582_v44 }
 0x330   : > { %1620 = vmatpush1.bf16.msra.mxu1 %v3580_v45 }
 0x331   : > { %1621 = vmatprep.subr.bf16.mxu1 %v3585_v46 }
 0x334   : > { %1622 = vmatpush1.bf16.msra.mxu1 %v3583_v47  ;;  %v3631_v47 = vld [vmem:[%s4654_s9 + $0x60] sm:$0xff]  }
 0x335   : > { %1623 = vmatprep.subr.bf16.mxu1 %v3588_v48 }
 0x338   : > { %1624 = vmatpush1.bf16.msra.mxu1 %v3586_v49 }
 0x339   : > { %1625 = vmatprep.subr.bf16.mxu1 %v3591_v50  ;;  %v3633_v50 = vld [vmem:[%s4654_s9 + $0x68] sm:$0xff]  }
 0x33c   : > { %1626 = vmatpush1.bf16.msra.mxu1 %v3589_v51  ;;  %v3635_v51 = vld [vmem:[%s4654_s9 + $0x70] sm:$0xff]  }
 0x33d   : > { %1627 = vmatprep.subr.bf16.mxu1 %v3594_v52  ;;  %v3637_v52 = vld [vmem:[%s4654_s9 + $0x78] sm:$0xff]  }
 0x340   : > { %1628 = vmatpush1.bf16.msra.mxu1 %v3592_v53  ;;  %v3639_v53 = vld [vmem:[%s4654_s9 + $0x80] sm:$0xff]  }
 0x341   : > { %1629 = vmatprep.subr.bf16.mxu1 %v3597_v54  ;;  %v3640_v54 = vld [vmem:[%s4654_s9 + $0x50] sm:$0xff]  }
 0x344   : > { %1630 = vmatpush1.bf16.msra.mxu1 %v3595_v55  ;;  %v3641_v55 = vld [vmem:[%s4654_s9 + $0x88] sm:$0xff]  }
 0x345   : > { %1750 = vmatprep.subr.bf16.mxu1 %v3600_v56  ;;  %v3642_v56 = vld [vmem:[%s4654_s9 + $0x58] sm:$0xff]  }
 0x347   : > { %2995 = vmatmul.mubr.msk.bf16.vlgmr.msra.gmra.mrb[4].mxu1 %vm1498_vm6, %v4217_v34  ;;  %v3629_v34 = vld [vmem:[%s4653_s8 + $0x50] sm:$0xff]  }
 0x348   : > { %1751 = vmatpush1.bf16.msra.mxu1 %v3598_v57  ;;  %1782 = vmatprep.mubr.bf16.mxu1 %v3745_v2 }
 0x349   : > { %1752 = vmatprep.subr.bf16.mxu1 %v3603_v58 }
 0x34c   : > { %1753 = vmatpush1.bf16.msra.mxu1 %v3601_v59 }
 0x34d   : > { %1754 = vmatprep.subr.bf16.mxu1 %v3606_v60 }
 0x350   : > { %1755 = vmatpush1.bf16.msra.mxu1 %v3604_v61 }
 0x351   : > { %1756 = vmatprep.subr.bf16.mxu1 %v3609_v62 }
 0x354   : > { %1757 = vmatpush1.bf16.msra.mxu1 %v3607_v63 }
 0x355   : > { %1758 = vmatprep.subr.bf16.mxu1 %v3612_v0 }
 0x358   : > { %1759 = vmatpush1.bf16.msra.mxu1 %v3610_v1 }
 0x359   : > { %1760 = vmatprep.subr.bf16.mxu1 %v3615_v3  ;;  %v3643_v3 = vld [vmem:[%s4654_s9] sm:$0xff]  }
 0x35c   : > { %1761 = vmatpush1.bf16.msra.mxu1 %v3613_v4 }
 0x35d   : > { %1762 = vmatprep.subr.bf16.mxu1 %v3618_v5  ;;  %v3644_v5 = vld [vmem:[%s4654_s9 + $0x8] sm:$0xff]  }
 0x360   : > { %1763 = vmatpush1.bf16.msra.mxu1 %v3616_v6  ;;  %v3645_v6 = vld [vmem:[%s4654_s9 + $0x10] sm:$0xff]  }
 0x361   : > { %3227 = vmatprep.subr.bf16.mxu1 %v3746_v39 }
 0x363   : > { %3024 = vmatmul.mubr.msk.bf16.vlgmr.msra.gmra.mrb[4].mxu1 %vm1498_vm6, %v1676_v7  ;;  %v3646_v7 = vld [vmem:[%s4654_s9 + $0x18] sm:$0xff]  }
 0x364   : > { %3228 = vmatpush3.bf16.msra.mxu1 %v3632_v40  ;;  %3239 = vmatprep.mubr.msk.bf16.mxu1 %vm3747_vm9, %v3746_v39  ;;  %v3659_v40 = vld [vmem:[%s4656_s11 + $0x10] sm:$0xff]  }
 0x365   : > { %3229 = vmatprep.subr.bf16.mxu1 %v3746_v39 }
 0x436   : > { %v1784_v12 = vpop.f32.mrb[4].mxu1 }
 0x437   : > { %v1809_v13 = vadd.f32 %v1802_v9, %v1784_v12  ;;  %v1786_v14 = vpop.f32.mrb[5].mxu1  ;;  %v3650_v12 = vld [vmem:[%s4656_s11 + $0x48] sm:$0xff]  }
 0x438   : > { %v1810_v15 = vadd.f32 %v1806_v11, %v1786_v14  ;;  %v1788_v16 = vpop.f32.mrb[6].mxu1  ;;  %v3652_v14 = vld [vmem:[%s4656_s11 + $0x58] sm:$0xff]  }
 0x439   : > { %v1811_v17 = vadd.f32 %v1802_v9, %v1788_v16  ;;  %v1790_v18 = vpop.f32.mrb[7].mxu1  ;;  %v1813_v20 = vmax.f32 %v1809_v13, 0.0  ;;  %v3648_v9 = vld [vmem:[%s4654_s9 + $0x28] sm:$0xff]   ;;  %v3651_v13 = vld [vmem:[%s4656_s11 + $0x50] sm:$0xff]  }
 0x43a   : > { %v1812_v19 = vadd.f32 %v1806_v11, %v1790_v18  ;;  %v1814_v22 = vmax.f32 %v1810_v15, 0.0  ;;  %v3649_v11 = vld [vmem:[%s4656_s11 + $0x40] sm:$0xff]   ;;  %v3654_v16 = vld [vmem:[%s4656_s11 + $0x68] sm:$0xff]   ;;  %v3656_v18 = vld [vmem:[%s4656_s11 + $0x78] sm:$0xff]  }
 0x43b   : > { %v1815_v21 = vmax.f32 %v1811_v17, 0.0  ;;  %v3653_v15 = vld [vmem:[%s4656_s11 + $0x60] sm:$0xff]   ;;  %v3655_v17 = vld [vmem:[%s4656_s11 + $0x70] sm:$0xff]  }
 0x43c   : > { %v1816_v23 = vmax.f32 %v1812_v19, 0.0 }
 0x43d   : > { %v1817_v24 = vpack.c.bf16 %v1815_v21, %v1813_v20 }
 0x43e   : > { %v1818_v25 = vpack.c.bf16 %v1816_v23, %v1814_v22 }
 0x43f   : > { %v1825_v10 = vsel %vm1009_vm1, %v1817_v24, 0 }
 0x440   : > { %3025 = vmatprep.subr.msk.bf16.mxu0 %vm1009_vm1, %v1818_v25 }
 0x441   : > { %1831 = vmatpush1.bf16.msra.mxu0 %v1825_v10 }
 0x442   : > { %1973 = vmatprep.subr.bf16.mxu0 %v3745_v2 }
 0x444   : > { %3026 = vmatmul.mubr.msk.bf16.vlgmr.msra.gmra.mrb[12].mxu0 %vm1820_vm7, %v1819_v35 }
 0x445   : > { %1974 = vmatpush1.bf16.msra.mxu0 %v3619_v36 }
 0x446   : > { %1975 = vmatprep.subr.bf16.mxu0 %v3745_v2 }
 0x449   : > { %1976 = vmatpush1.bf16.msra.mxu0 %v3620_v38 }
 0x44a   : > { %1977 = vmatprep.subr.bf16.mxu0 %v3745_v2 }
 0x44d   : > { %1978 = vmatpush1.bf16.msra.mxu0 %v3621_v26  ;;  %v3085_v26 = vld [vmem:[%s4655_s10] ss:$0 sm:$0xff] }
 0x44e   : > { %1979 = vmatprep.subr.bf16.mxu0 %v3745_v2 }
 0x451   : > { %1980 = vmatpush1.bf16.msra.mxu0 %v3622_v27 }
 0x452   : > { %1981 = vmatprep.subr.bf16.mxu0 %v3745_v2 }
 0x455   : > { %1982 = vmatpush1.bf16.msra.mxu0 %v3623_v28 }
 0x456   : > { %1983 = vmatprep.subr.bf16.mxu0 %v3745_v2 }
 0x459   : > { %1984 = vmatpush1.bf16.msra.mxu0 %v3624_v29 }
 0x45a   : > { %1985 = vmatprep.subr.bf16.mxu0 %v3745_v2 }
 0x45d   : > { %1986 = vmatpush1.bf16.msra.mxu0 %v3625_v30 }
 0x45e   : > { %1987 = vmatprep.subr.bf16.mxu0 %v3745_v2 }
 0x461   : > { %1988 = vmatpush1.bf16.msra.mxu0 %v3626_v31 }
 0x462   : > { %1989 = vmatprep.subr.bf16.mxu0 %v3745_v2 }
 0x465   : > { %1990 = vmatpush1.bf16.msra.mxu0 %v3627_v32 }
 0x466   : > { %1991 = vmatprep.subr.bf16.mxu0 %v3745_v2 }
 0x469   : > { %1992 = vmatpush1.bf16.msra.mxu0 %v3628_v33  ;;  %v3657_v33 = vld [vmem:[%s4656_s11] sm:$0xff]  }
 0x46a   : > { %1993 = vmatprep.subr.bf16.mxu0 %v3745_v2 }
 0x46d   : > { %1994 = vmatpush1.bf16.msra.mxu0 %v3629_v34 }
 0x46e   : > { %1995 = vmatprep.subr.bf16.mxu0 %v3745_v2  ;;  %v3634_v2 = vld [vmem:[%s4654_s9 + $0x38] sm:$0xff]  }
 0x46f   : > { %3230 = vmatpush3.bf16.msra.mxu1 %v3634_v2  ;;  %v3660_v2 = vld [vmem:[%s4656_s11 + $0x18] sm:$0xff]  }
 0x470   : > { %3231 = vmatprep.subr.bf16.mxu1 %v3746_v39 }
 0x471   : > { %1996 = vmatpush1.bf16.msra.mxu0 %v3630_v37  ;;  %v3658_v37 = vld [vmem:[%s4656_s11 + $0x8] sm:$0xff]  }
 0x472   : > { %3259 = vmatprep.subr.bf16.mxu0 %v3746_v39 }
 0x473   : > { %3232 = vmatpush3.bf16.msra.mxu1 %v3636_v41  ;;  %v3661_v41 = vld [vmem:[%s4656_s11 + $0x20] sm:$0xff]  }
 0x474   : > { %3233 = vmatprep.subr.bf16.mxu1 %v3746_v39 }
 0x477   : > { %3234 = vmatpush3.bf16.msra.mxu1 %v3638_v42  ;;  %v3662_v42 = vld [vmem:[%s4656_s11 + $0x28] sm:$0xff]  }
 0x478   : > { %3235 = vmatprep.subr.bf16.mxu1 %v3746_v39 }
 0x47b   : > { %3236 = vmatpush3.bf16.msra.mxu1 %v3640_v54 }
 0x47c   : > { %3237 = vmatprep.subr.bf16.mxu1 %v3746_v39 }
 0x47f   : > { %3238 = vmatpush3.bf16.msra.mxu1 %v3642_v56  ;;  %v3675_v56 = vld [vmem:[%s4656_s11 + $0xd0] sm:$0xff]  }
 0x480   : > { %3243 = vmatprep.subr.bf16.mxu1 %v3746_v39 }
 0x517   : > { %v1864_v43 = vpop.f32.mrb[12].mxu0 }
 0x518   : > { %v1866_v44 = vpop.f32.mrb[13].mxu0  ;;  %v1871_v48 = vpack.c.bf16 %v1864_v43, %v1864_v43  ;;  %v3663_v43 = vld [vmem:[%s4656_s11 + $0x30] sm:$0xff]  }
 0x519   : > { %v1872_v45 = vpack.c.bf16 %v1866_v44, %v1866_v44  ;;  %v1868_v46 = vpop.f32.mrb[14].mxu0  ;;  %v3664_v44 = vld [vmem:[%s4656_s11 + $0x38] sm:$0xff]  }
 0x51a   : > { %v1869_v49 = vpop.f32.mrb[15].mxu0  ;;  %v3666_v46 = vld [vmem:[%s4656_s11 + $0x88] sm:$0xff]  }
 0x51b   : > { %3039 = vmatprep.mubr.msk.bf16.mxu0 %vm1969_vm8, %v1872_v45  ;;  %v3665_v45 = vld [vmem:[%s4656_s11 + $0x80] sm:$0xff]  }
 0x51c   : > { %2006 = vmatmul.mubr.bf16.vlgmr.msra.gmra.mrb[16].mxu0 %v1871_v48  ;;  %v3668_v48 = vld [vmem:[%s4656_s11 + $0x98] sm:$0xff]   ;;  %v3669_v49 = vld [vmem:[%s4656_s11 + $0xa0] sm:$0xff]  }
 0x51d   : > { %3260 = vmatpush3.bf16.msra.mxu0 %v3631_v47  ;;  %3271 = vmatprep.mubr.msk.bf16.mxu0 %vm3747_vm9, %v3746_v39  ;;  %v3667_v47 = vld [vmem:[%s4656_s11 + $0x90] sm:$0xff]  }
 0x51e   : > { %3261 = vmatprep.subr.bf16.mxu0 %v3746_v39 }
 0x521   : > { %3262 = vmatpush3.bf16.msra.mxu0 %v3633_v50  ;;  %v3670_v50 = vld [vmem:[%s4656_s11 + $0xa8] sm:$0xff]  }
 0x522   : > { %3263 = vmatprep.subr.bf16.mxu0 %v3746_v39 }
 0x525   : > { %3264 = vmatpush3.bf16.msra.mxu0 %v3635_v51  ;;  %v3671_v51 = vld [vmem:[%s4656_s11 + $0xb0] sm:$0xff]  }
 0x526   : > { %3265 = vmatprep.subr.bf16.mxu0 %v3746_v39 }
 0x529   : > { %3266 = vmatpush3.bf16.msra.mxu0 %v3637_v52  ;;  %v3672_v52 = vld [vmem:[%s4656_s11 + $0xb8] sm:$0xff]  }
 0x52a   : > { %3267 = vmatprep.subr.bf16.mxu0 %v3746_v39 }
 0x52d   : > { %3268 = vmatpush3.bf16.msra.mxu0 %v3639_v53  ;;  %v3673_v53 = vld [vmem:[%s4656_s11 + $0xc0] sm:$0xff]  }
 0x52e   : > { %3269 = vmatprep.subr.bf16.mxu0 %v3746_v39 }
 0x531   : > { %3270 = vmatpush3.bf16.msra.mxu0 %v3641_v55  ;;  %v3674_v55 = vld [vmem:[%s4656_s11 + $0xc8] sm:$0xff]  }
 0x5ef   : > { %v2007_v57 = vpop.f32.mrb[16].mxu0 }
 0x5f0   : > { %v2013_v58 = vpack.c.bf16 %v2007_v57, %v2007_v57  ;;  %v2009_v59 = vpop.f32.mrb[17].mxu0  ;;  %v3676_v57 = vld [vmem:[%s4656_s11 + $0xd8] sm:$0xff]  }
 0x5f1   : > { %v2010_v60 = vpop.f32.mrb[18].mxu0  ;;  %v3678_v59 = vld [vmem:[%s4656_s11 + $0xe8] sm:$0xff]  }
 0x5f2   : > { %v2042_v61 = vshll.u32 %v2013_v58, 16  ;;  %v2217_v62 = vrot.slane %v2013_v58, 1  ;;  %v2011_v63 = vpop.f32.mrb[19].mxu0  ;;  %v2040_v0 = vshrl.u32 %v2013_v58, 16  ;;  %v3679_v60 = vld [vmem:[%s4656_s11 + $0xf0] sm:$0xff]  }
 0x5f4   : > { %v2044_v1 = vrot.slane %v2042_v61, 1  ;;  %3272 = vmatmul.mubr.msk.bf16.vlgmr.msra.gmra.mrb[20].mxu0 %vm527_vm3, %v2217_v62  ;;  %v3680_v61 = vld [vmem:[%s4656_s11 + $0xf8] sm:$0xff]  }
 0x5f6   : > { %v2045_v4 = vor.u32 %v2044_v1, %v2040_v0 }
 0x5f8   : > { %3240 = vmatmul.mubr.msk.bf16.vlgmr.msra.gmra.mrb[8].mxu1 %vm527_vm3, %v2045_v4 }
 0x5f9   : > { %3244 = vmatpush3.bf16.msra.mxu1 %v3643_v3  ;;  %3255 = vmatprep.mubr.msk.bf16.mxu1 %vm3747_vm9, %v3746_v39 }
 0x5fa   : > { %3245 = vmatprep.subr.bf16.mxu1 %v3746_v39 }
 0x5fd   : > { %3246 = vmatpush3.bf16.msra.mxu1 %v3644_v5 }
 0x5fe   : > { %3247 = vmatprep.subr.bf16.mxu1 %v3746_v39 }
 0x601   : > { %3248 = vmatpush3.bf16.msra.mxu1 %v3645_v6 }
 0x602   : > { %3249 = vmatprep.subr.bf16.mxu1 %v3746_v39 }
 0x605   : > { %3250 = vmatpush3.bf16.msra.mxu1 %v3646_v7 }
 0x606   : > { %3251 = vmatprep.subr.bf16.mxu1 %v3746_v39 }
 0x609   : > { %3252 = vmatpush3.bf16.msra.mxu1 %v3647_v8 }
 0x60a   : > { %3253 = vmatprep.subr.bf16.mxu1 %v3746_v39 }
 0x60d   : > { %3254 = vmatpush3.bf16.msra.mxu1 %v3648_v9 }
 0x60e   : > { %3275 = vmatprep.subr.bf16.mxu1 %v3746_v39 }
 0x610   : > { %3256 = vmatmul.mubr.msk.bf16.vlgmr.msra.gmra.mrb[12].mxu1 %vm527_vm3, %v2013_v58  ;;  %v3677_v58 = vld [vmem:[%s4656_s11 + $0xe0] sm:$0xff]  }
 0x611   : > { %3291 = vmatprep.mubr.msk.bf16.mxu1 %vm3747_vm9, %v3746_v39  ;;  %3276 = vmatpush3.bf16.msra.mxu1 %v3649_v11 }
 0x612   : > { %3277 = vmatprep.subr.bf16.mxu1 %v3746_v39 }
 0x615   : > { %3278 = vmatpush3.bf16.msra.mxu1 %v3650_v12 }
 0x616   : > { %3279 = vmatprep.subr.bf16.mxu1 %v3746_v39 }
 0x619   : > { %3280 = vmatpush3.bf16.msra.mxu1 %v3651_v13 }
 0x61a   : > { %3281 = vmatprep.subr.bf16.mxu1 %v3746_v39 }
 0x61d   : > { %3282 = vmatpush3.bf16.msra.mxu1 %v3652_v14 }
 0x61e   : > { %3283 = vmatprep.subr.bf16.mxu1 %v3746_v39 }
 0x621   : > { %3284 = vmatpush3.bf16.msra.mxu1 %v3653_v15 }
 0x622   : > { %3285 = vmatprep.subr.bf16.mxu1 %v3746_v39 }
 0x625   : > { %3286 = vmatpush3.bf16.msra.mxu1 %v3654_v16 }
 0x626   : > { %3287 = vmatprep.subr.bf16.mxu1 %v3746_v39 }
 0x629   : > { %3288 = vmatpush3.bf16.msra.mxu1 %v3655_v17 }
 0x62a   : > { %3289 = vmatprep.subr.bf16.mxu1 %v3746_v39 }
 0x62d   : > { %3290 = vmatpush3.bf16.msra.mxu1 %v3656_v18 }
 0x62e   : > { %3295 = vmatprep.subr.bf16.mxu1 %v3746_v39 }
 0x6c7   : > { %v2291_v19 = vpop.f32.mrb[20].mxu0 }
 0x6c8   : > { %v3273_v20 = vpop.f32.mrb[21].mxu0 }
 0x6c9   : > { %v2294_v21 = vpop.f32.mrb[22].mxu0 }
 0x6ca   : > { %v3274_v22 = vpop.f32.mrb[23].mxu0 }
 0x6cb   : > { %v2119_v23 = vpop.f32.mrb[8].mxu1 }
 0x6cc   : > { %v3241_v24 = vpop.f32.mrb[9].mxu1 }
 0x6cd   : > { %v2122_v25 = vpop.f32.mrb[10].mxu1 }
 0x6ce   : > { %v3242_v10 = vpop.f32.mrb[11].mxu1 }
 0x6e3   : > { %v2197_v35 = vpop.f32.mrb[12].mxu1 }
 0x6e4   : > { %v2198_v36 = vadd.f32 %v2197_v35, %v2119_v23  ;;  %v3257_v38 = vpop.f32.mrb[13].mxu1 }
 0x6e5   : > { %v2200_v27 = vpop.f32.mrb[14].mxu1 }
 0x6e6   : > { %v2297_v28 = vadd.f32 %v2291_v19, %v2198_v36  ;;  %v3258_v29 = vpop.f32.mrb[15].mxu1 }
 0x6e8   : > { %v2305_v30 = vadd.f32 %v3085_v26, %v2297_v28 }
 0x6ea   : > { %v2306_v31 = vmax.f32 %v2305_v30, 0.0 }
 0x6ec   : > { %v4488_v32 = vpack.c.bf16 %v2306_v31, %v2306_v31 }
 0x6ee   : > { %v2342_v34 = vshrl.u32 %v4488_v32, 16  ;;  %v2539_v54 = vrot.slane %v4488_v32, 1 }
 0x6f0   : > { %3292 = vmatmul.mubr.bf16.vlgmr.msra.gmra.mrb[16].mxu1 %v2342_v34  ;;  %v2647_v62 = vrot.slane %v2342_v34, 1 }
 0x6f1   : > { %3296 = vmatpush3.bf16.msra.mxu1 %v3657_v33  ;;  %3311 = vmatprep.mubr.msk.bf16.mxu1 %vm3747_vm9, %v3746_v39 }
 0x6f2   : > { %3297 = vmatprep.subr.bf16.mxu1 %v3746_v39 }
 0x6f5   : > { %3298 = vmatpush3.bf16.msra.mxu1 %v3658_v37 }
 0x6f6   : > { %3299 = vmatprep.subr.bf16.mxu1 %v3746_v39 }
 0x6f9   : > { %3300 = vmatpush3.bf16.msra.mxu1 %v3659_v40 }
 0x6fa   : > { %3301 = vmatprep.subr.bf16.mxu1 %v3746_v39 }
 0x6fd   : > { %3302 = vmatpush3.bf16.msra.mxu1 %v3660_v2 }
 0x6fe   : > { %3303 = vmatprep.subr.bf16.mxu1 %v3746_v39 }
 0x701   : > { %3304 = vmatpush3.bf16.msra.mxu1 %v3661_v41 }
 0x702   : > { %3305 = vmatprep.subr.bf16.mxu1 %v3746_v39 }
 0x705   : > { %3306 = vmatpush3.bf16.msra.mxu1 %v3662_v42 }
 0x706   : > { %3307 = vmatprep.subr.bf16.mxu1 %v3746_v39 }
 0x709   : > { %3308 = vmatpush3.bf16.msra.mxu1 %v3663_v43 }
 0x70a   : > { %3309 = vmatprep.subr.bf16.mxu1 %v3746_v39 }
 0x70d   : > { %3310 = vmatpush3.bf16.msra.mxu1 %v3664_v44 }
 0x70e   : > { %3315 = vmatprep.subr.bf16.mxu1 %v3746_v39 }
 0x710   : > { %3312 = vmatmul.mubr.bf16.vlgmr.msra.gmra.mrb[16].mxu1 %v4488_v32 }
 0x711   : > { %3316 = vmatpush3.bf16.msra.mxu1 %v3665_v45  ;;  %3331 = vmatprep.mubr.msk.bf16.mxu1 %vm3747_vm9, %v3746_v39 }
 0x712   : > { %3317 = vmatprep.subr.bf16.mxu1 %v3746_v39 }
 0x715   : > { %3318 = vmatpush3.bf16.msra.mxu1 %v3666_v46 }
 0x716   : > { %3319 = vmatprep.subr.bf16.mxu1 %v3746_v39 }
 0x719   : > { %3320 = vmatpush3.bf16.msra.mxu1 %v3667_v47 }
 0x71a   : > { %3321 = vmatprep.subr.bf16.mxu1 %v3746_v39 }
 0x71d   : > { %3322 = vmatpush3.bf16.msra.mxu1 %v3668_v48 }
 0x71e   : > { %3323 = vmatprep.subr.bf16.mxu1 %v3746_v39 }
 0x721   : > { %3324 = vmatpush3.bf16.msra.mxu1 %v3669_v49 }
 0x722   : > { %3325 = vmatprep.subr.bf16.mxu1 %v3746_v39 }
 0x725   : > { %3326 = vmatpush3.bf16.msra.mxu1 %v3670_v50 }
 0x726   : > { %3327 = vmatprep.subr.bf16.mxu1 %v3746_v39 }
 0x729   : > { %3328 = vmatpush3.bf16.msra.mxu1 %v3671_v51 }
 0x72a   : > { %3329 = vmatprep.subr.bf16.mxu1 %v3746_v39 }
 0x72d   : > { %3330 = vmatpush3.bf16.msra.mxu1 %v3672_v52 }
 0x72e   : > { %3335 = vmatprep.subr.bf16.mxu1 %v3746_v39 }
 0x730   : > { %3332 = vmatmul.mubr.bf16.vlgmr.msra.gmra.mrb[16].mxu1 %v2539_v54 }
 0x731   : > { %3336 = vmatpush3.bf16.msra.mxu1 %v3673_v53  ;;  %3351 = vmatprep.mubr.msk.bf16.mxu1 %vm3747_vm9, %v3746_v39 }
 0x732   : > { %3337 = vmatprep.subr.bf16.mxu1 %v3746_v39 }
 0x735   : > { %3338 = vmatpush3.bf16.msra.mxu1 %v3674_v55 }
 0x736   : > { %3339 = vmatprep.subr.bf16.mxu1 %v3746_v39 }
 0x739   : > { %3340 = vmatpush3.bf16.msra.mxu1 %v3675_v56 }
 0x73a   : > { %3341 = vmatprep.subr.bf16.mxu1 %v3746_v39 }
 0x73d   : > { %3342 = vmatpush3.bf16.msra.mxu1 %v3676_v57 }
 0x73e   : > { %3343 = vmatprep.subr.bf16.mxu1 %v3746_v39 }
 0x741   : > { %3344 = vmatpush3.bf16.msra.mxu1 %v3677_v58 }
 0x742   : > { %3345 = vmatprep.subr.bf16.mxu1 %v3746_v39 }
 0x745   : > { %3346 = vmatpush3.bf16.msra.mxu1 %v3678_v59 }
 0x746   : > { %3347 = vmatprep.subr.bf16.mxu1 %v3746_v39 }
 0x749   : > { %3348 = vmatpush3.bf16.msra.mxu1 %v3679_v60 }
 0x74a   : > { %3349 = vmatprep.subr.bf16.mxu1 %v3746_v39 }
 0x74d   : > { %3350 = vmatpush3.bf16.msra.mxu1 %v3680_v61 }
 0x750   : > { %3352 = vmatmul.mubr.bf16.vlgmr.msra.gmra.mrb[16].mxu1 %v2647_v62 }
 0x823   : > { %v2731_v39 = vpop.f32.mrb[16].mxu1 }
 0x824   : > { %2739 = vst.msk [vmem:[%s405_s26] sm:$0x1] %vm2738_vm10, %v2731_v39  ;;  %v3353_v63 = vpop.f32.mrb[17].mxu1 }
 0x825   : > { %v2734_v0 = vpop.f32.mrb[18].mxu1 }
 0x826   : > { %3694 = shalt.err (!%p3691_p3)
}
 0x827   : > { %s3695_s20 = scalar_lea.hbm %s4603_s15, 16  ;;  %s3699_s30 = scalar_lea.hbm %s4657_s12, 32 }
 0x828   : > { %p3696_p4 = scmp.ne.s32.totalorder %s4603_s15, %s3695_s20  ;;  %p3700_p9 = scmp.lt.u32.totalorder %s4603_s15, %s4657_s12 }
 0x829   : > { %p3701_p10 = scmp.lt.u32.totalorder %s3699_s30, %s3695_s20  ;;  %p3703_p12 = scmp.lt.u32.totalorder %s3695_s20, %s4603_s15 }
 0x82a   : > { %p3697_p7 = pnand %p3696_p4, %p3852_p5 }
 0x82b   : > { %p3702_p11 = por %p3701_p10, %p3700_p9 }
 0x82c   : > { %p3698_p8 = pneg %p3697_p7 }
 0x82d   : > { %p3704_p13 = por %p3703_p12, %p3702_p11 }
 0x82f   : > { %p3705_p0 = pnand %p3704_p13, %p3698_p8 }
 0x831   : > { %3708 = shalt.err (!%p3705_p0)
}
 0x832   : > { %3407 = dma.vmem_to_hbm [thread:$0]  (%p3852_p5), %s4605_s23, 16, %s4603_s15, %s2741_s16   ;;  %v3354_v1 = vpop.f32.mrb[19].mxu1 }
 0x833 PF: > { %p3413_p1 = scmp.ge.s32.totalorder %s3743_s24, 2  ;;  %s2765_s17 = sand.u32 1, %s3731_s21  }
 0x834   : > { %s2766_s25 = scalar_lea.sflag [#allocation3], %s2765_s17 }
 0x835   : > { %p3410_p2 = pnand %p3413_p1, %p3856_p6 }
 0x837   : > { %3726 = dma.done.wait (!%p3410_p2), %s2766_s25, 16  }
 0x838   : > { %3728 = vsyncadd (!%p3410_p2), %s2766_s25, 4294967280  ;;  %s4669_s24 = sld [smem:[#allocation6_spill]]  ;;  %s4670_s18 = sld [smem:[#allocation5_spill]] }
 0x839   : > { %s4671_s23 = sld [smem:[#allocation7_spill]]  ;;  %s4672_s21 = smov %s3735_s22 }
 0x83e   : > { %p22_p3 = scmp.ge.s32.totalorder %s4669_s24, 4   ;;  %s4673_s22 = smov %s4670_s18 }
 0x840   :  { %24 = sbr.rel (!%p22_p3) target bundleno = 3 (0x3), region = 114 }
 0x847   :  { %2770 = vsyncpa [#allocation3], 1 }
 0x848   :  { %2772 = vsyncpa [#allocation3 + $0x1], 1 }

</bundles_post_ra>
